<compile_context>
chip_gen: v7x
topology: tpu7x:2x2x1
jax: 0.10.0
libtpu: 0.0.40
codegen_flags: <defaults>
</compile_context>

<pallas_src>
import functools

import jax
import jax.numpy as jnp
from jax.experimental import pallas as pl
from jax.experimental.pallas import tpu as pltpu


# ---------------------------------------------------------------------------
# Kernels
# ---------------------------------------------------------------------------
def aff_fused_kernel(x_ref, r_ref, w1t_ref, b1_ref, w2t_ref,
                     gw1t_ref, gb1_ref, gw2t_ref, b2h_ref, o_ref,
                     *, nb, inv_hw, attn_bf16):
    # x/r/o blocks: (Nb, C, HWp) -- channels on sublanes, spatial on lanes.
    w1t = w1t_ref[...]            # (Ci, C)  BN1 scale folded, input dtype
    b1 = b1_ref[...]              # (Ci, 1)  f32
    w2t = w2t_ref[...]            # (C, Ci)  0.5 * BN2-scaled weights
    gw1t = gw1t_ref[...]          # (Ci, C)  f32
    gb1 = gb1_ref[...]            # (Ci, 1)  f32
    gw2t = gw2t_ref[...]          # (C, Ci)  f32, 0.5 folded
    b2h = b2h_ref[...]            # (C, 1)   0.5*(b2 + gb2), f32

    for b in range(nb):           # small static batch block -> unrolled
        x = x_ref[b]              # (C, T) input dtype
        r = r_ref[b]
        xa = x + r

        # -- global branch: per-channel mean over the (unpadded) HW lanes.
        # Padded lanes hold zeros, so sum * (1/HW) is exact.
        m = jnp.sum(xa.astype(jnp.float32), axis=1, keepdims=True) * inv_hw   # (C,1)
        g = jnp.dot(gw1t, m, preferred_element_type=jnp.float32) + gb1        # (Ci,1)
        g = jnp.maximum(g, 0.0)
        gv = jnp.dot(gw2t, g, preferred_element_type=jnp.float32) + b2h       # (C,1)

        # -- local branch: 1x1 -> BN -> ReLU -> 1x1 -> BN (scales folded).
        h = jnp.dot(w1t, xa, preferred_element_type=jnp.float32) + b1         # (Ci,T) f32
        h = jnp.maximum(h, 0.0)
        z = jnp.dot(w2t, h, preferred_element_type=jnp.float32) + gv          # (C,T) f32
        # z == 0.5 * (xl + xg); sigmoid fusion via tanh.
        if attn_bf16:
            z = z.astype(jnp.bfloat16)
        wei_t = jnp.tanh(z)       # == 2*sigmoid(xl+xg) - 1

        # 2*x*wei + 2*r*(1-wei) == (x+r) + (2*wei-1)*(x-r)
        o_ref[b] = (xa + wei_t * (x - r)).astype(o_ref.dtype)


def aff_tiled_kernel(x_ref, r_ref, gvh_ref, w1t_ref, b1_ref, w2t_ref, o_ref,
                     *, attn_bf16):
    # Streaming fallback for large HW; gv (already halved, b2 folded) per batch.
    x = x_ref[0]                  # (C, T)
    r = r_ref[0]
    xa = x + r
    h = jnp.dot(w1t_ref[...], xa, preferred_element_type=jnp.float32) + b1_ref[...]
    h = jnp.maximum(h, 0.0)                                                   # (Ci,T) f32
    z = jnp.dot(w2t_ref[...], h, preferred_element_type=jnp.float32) + gvh_ref[0]
    if attn_bf16:
        z = z.astype(jnp.bfloat16)
    wei_t = jnp.tanh(z)
    o_ref[0] = (xa + wei_t * (x - r)).astype(o_ref.dtype)


# ---------------------------------------------------------------------------
# Wrapper
# ---------------------------------------------------------------------------
def _round_up(v, m):
    return ((v + m - 1) // m) * m


def _bytes_per_elem(itemsize):
    # x, r, out double-buffered by the pipeline + f32 intermediates margin.
    return 3 * 2 * itemsize + 16


def _pick_hw_tile(hwp, tile_hw, c, itemsize, budget):
    """Largest multiple of 128 dividing hwp that fits tile_hw and the budget."""
    cap = budget // (c * _bytes_per_elem(itemsize))
    cap = max(128, min(tile_hw, cap, hwp))
    t = (cap // 128) * 128
    while hwp % t != 0:
        t -= 128
    return t


def aff_forward(x_nchw, res_nchw, params, *, tile_hw=4096, vmem_budget=14 << 20,
                max_batch_block=8, force_tiled=False, attn_bf16=None,
                vmem_limit_bytes=None):
    N, C, H, W = x_nchw.shape
    HW = H * W
    HWp = _round_up(HW, 128)          # lane-dense output stores
    Ci = params["w1"].shape[1]
    dt = x_nchw.dtype
    itemsize = jnp.dtype(dt).itemsize
    if attn_bf16 is None:
        # bf16 tanh path only where the VPU/EUP have bf16 units (v6e/v7x) and
        # the inputs are already bf16; keep f32 math for f32 inputs / v5e.
        attn_bf16 = dt == jnp.bfloat16

    # NCHW -> (N, C, HW): free view, no transpose.
    x = x_nchw.reshape(N, C, HW)
    r = res_nchw.reshape(N, C, HW)

    # Eval-mode BN scales folded into the 1x1 weights; the 0.5 of the tanh
    # rewrite folded into the second conv and all output-side biases (free).
    w1t = (params["w1"] * params["s1"]).T.astype(dt)                   # (Ci, C)
    b1c = params["b1"].reshape(Ci, 1).astype(jnp.float32)              # (Ci, 1)
    w2t_half = (0.5 * (params["w2"] * params["s2"])).T.astype(dt)      # (C, Ci)

    # Zero-pad HW to a multiple of 128 (padded lanes stay zero through the math).
    if HWp != HW:
        pad = ((0, 0), (0, 0), (0, HWp - HW))
        xp, rp = jnp.pad(x, pad), jnp.pad(r, pad)
    else:
        xp, rp = x, r

    slab_bytes = C * HWp * _bytes_per_elem(itemsize)   # one batch element
    use_fused = (not force_tiled) and slab_bytes <= vmem_budget

    if use_fused:
        # Batch block: largest divisor of N within the budget (amortizes the
        # fixed per-grid-step overhead on small feature maps).
        nb = 1
        for d in range(min(N, max_batch_block), 0, -1):
            if N % d == 0 and d * slab_bytes <= vmem_budget:
                nb = d
                break

        gw1t = params["gw1"].T.astype(jnp.float32)                     # (Ci, C)
        gb1c = params["gb1"].reshape(Ci, 1).astype(jnp.float32)
        gw2t_half = (0.5 * params["gw2"]).T.astype(jnp.float32)        # (C, Ci)
        b2h = (0.5 * (params["b2"] + params["gb2"])).reshape(C, 1).astype(jnp.float32)

        kernel = functools.partial(aff_fused_kernel, nb=nb, inv_hw=1.0 / HW,
                                   attn_bf16=attn_bf16)
        out = pl.pallas_call(
            kernel,
            out_shape=jax.ShapeDtypeStruct((N, C, HWp), dt),
            grid_spec=pltpu.PrefetchScalarGridSpec(
                num_scalar_prefetch=0,
                grid=(N // nb,),
                in_specs=[
                    pl.BlockSpec((nb, C, HWp), lambda i: (i, 0, 0)),   # x
                    pl.BlockSpec((nb, C, HWp), lambda i: (i, 0, 0)),   # residual
                    pl.BlockSpec((Ci, C), lambda i: (0, 0)),           # w1t (BN1 folded)
                    pl.BlockSpec((Ci, 1), lambda i: (0, 0)),           # b1
                    pl.BlockSpec((C, Ci), lambda i: (0, 0)),           # 0.5 * w2t (BN2 folded)
                    pl.BlockSpec((Ci, C), lambda i: (0, 0)),           # gw1t
                    pl.BlockSpec((Ci, 1), lambda i: (0, 0)),           # gb1
                    pl.BlockSpec((C, Ci), lambda i: (0, 0)),           # 0.5 * gw2t
                    pl.BlockSpec((C, 1), lambda i: (0, 0)),            # 0.5 * (b2 + gb2)
                ],
                out_specs=pl.BlockSpec((nb, C, HWp), lambda i: (i, 0, 0)),
            ),
            compiler_params=pltpu.CompilerParams(
                dimension_semantics=("parallel",),
                vmem_limit_bytes=vmem_limit_bytes),
        )(xp, rp, w1t, b1c, w2t_half, gw1t, gb1c, gw2t_half, b2h)
    else:
        # Tiled streaming path for large feature maps: gv precomputed per batch
        # in XLA (one extra read of x, r; only used when the slab exceeds VMEM).
        m = jnp.mean(x.astype(jnp.float32) + r.astype(jnp.float32), axis=2)   # (N, C)
        g = jnp.maximum(m @ params["gw1"] + params["gb1"], 0.0)
        g = 0.5 * (g @ params["gw2"] + params["gb2"] + params["b2"])
        gvh = g.reshape(N, C, 1).astype(jnp.float32)

        tile = _pick_hw_tile(HWp, tile_hw, C, itemsize, vmem_budget)
        kernel = functools.partial(aff_tiled_kernel, attn_bf16=attn_bf16)
        out = pl.pallas_call(
            kernel,
            out_shape=jax.ShapeDtypeStruct((N, C, HWp), dt),
            grid_spec=pltpu.PrefetchScalarGridSpec(
                num_scalar_prefetch=0,
                grid=(N, HWp // tile),
                in_specs=[
                    pl.BlockSpec((1, C, tile), lambda n, t: (n, 0, t)),   # x
                    pl.BlockSpec((1, C, tile), lambda n, t: (n, 0, t)),   # residual
                    pl.BlockSpec((1, C, 1), lambda n, t: (n, 0, 0)),      # 0.5*(global + b2)
                    pl.BlockSpec((Ci, C), lambda n, t: (0, 0)),           # w1t
                    pl.BlockSpec((Ci, 1), lambda n, t: (0, 0)),           # b1
                    pl.BlockSpec((C, Ci), lambda n, t: (0, 0)),           # 0.5 * w2t
                ],
                out_specs=pl.BlockSpec((1, C, tile), lambda n, t: (n, 0, t)),
            ),
            compiler_params=pltpu.CompilerParams(
                dimension_semantics=("parallel", "parallel"),
                vmem_limit_bytes=vmem_limit_bytes),
        )(xp, rp, gvh, w1t, b1c, w2t_half)

    if HWp != HW:
        out = out[:, :, :HW]
    return out.reshape(N, C, H, W)


# ---------------------------------------------------------------------------
# Synthetic params (eval-mode BatchNorm expressed as per-channel scale/bias)
# ---------------------------------------------------------------------------
def init_params(key, channels=64, r=4, eps=1e-5):
    ci = channels // r
    ks = jax.random.split(key, 20)

    def nrm(k, shape, s=0.1):
        return jax.random.normal(k, shape, jnp.float32) * s

    def pos(k, shape):
        return jax.random.uniform(k, shape, jnp.float32, 0.5, 1.5)

    # local_att conv1 (C -> Ci) + BN(Ci)
    w1 = nrm(ks[0], (channels, ci))
    cb1 = nrm(ks[1], (ci,))
    g1, be1, mu1, v1 = pos(ks[2], (ci,)), nrm(ks[3], (ci,)), nrm(ks[4], (ci,)), pos(ks[5], (ci,))
    s1 = g1 / jnp.sqrt(v1 + eps)
    b1 = be1 + (cb1 - mu1) * s1

    # local_att conv2 (Ci -> C) + BN(C)
    w2 = nrm(ks[6], (ci, channels))
    cb2 = nrm(ks[7], (channels,))
    g2, be2, mu2, v2 = (pos(ks[8], (channels,)), nrm(ks[9], (channels,)),
                        nrm(ks[10], (channels,)), pos(ks[11], (channels,)))
    s2 = g2 / jnp.sqrt(v2 + eps)
    b2 = be2 + (cb2 - mu2) * s2

    # global_att conv1 (C -> Ci), conv2 (Ci -> C), no BN
    gw1 = nrm(ks[12], (channels, ci))
    gb1 = nrm(ks[13], (ci,))
    gw2 = nrm(ks[14], (ci, channels))
    gb2 = nrm(ks[15], (channels,))

    return {
        "w1": w1, "s1": s1.reshape(1, ci), "b1": b1.reshape(1, ci),
        "w2": w2, "s2": s2.reshape(1, channels), "b2": b2.reshape(1, channels),
        "gw1": gw1, "gb1": gb1.reshape(1, ci),
        "gw2": gw2, "gb2": gb2.reshape(1, channels),
    }


def aff_reference(x, res, p):
    """Pure-JAX reference of the same (eval-mode BN) forward (sigmoid form)."""
    N, C, H, W = x.shape
    xa = x + res
    xa_f = jnp.transpose(xa, (0, 2, 3, 1)).reshape(N, H * W, C)

    h = xa_f @ p["w1"] * p["s1"] + p["b1"]
    h = jnp.maximum(h, 0.0)
    xl = h @ p["w2"] * p["s2"] + p["b2"]

    m = jnp.mean(xa_f, axis=1, keepdims=True)
    g = jnp.maximum(m @ p["gw1"] + p["gb1"], 0.0)
    g = g @ p["gw2"] + p["gb2"]

    wei = jax.nn.sigmoid(xl + g)
    x_f = jnp.transpose(x, (0, 2, 3, 1)).reshape(N, H * W, C)
    r_f = jnp.transpose(res, (0, 2, 3, 1)).reshape(N, H * W, C)
    out = 2.0 * x_f * wei + 2.0 * r_f * (1.0 - wei)
    return jnp.transpose(out.reshape(N, H, W, C), (0, 3, 1, 2))


if __name__ == "__main__":
    channels, r = 64, 4
    key = jax.random.PRNGKey(0)
    kx, kr, kp = jax.random.split(key, 3)
    params = init_params(kp, channels=channels, r=r)

    # Case 1: lane-aligned HW (16*16=256): fused per-batch kernel, batch block
    # Nb=2, global branch computed in-kernel (single pass over x/residual).
    N, H, W = 2, 16, 16
    x = jax.random.normal(kx, (N, channels, H, W), jnp.float32)
    residual = jax.random.normal(kr, (N, channels, H, W), jnp.float32)
    out = jax.block_until_ready(aff_forward(x, residual, params))
    ref = aff_reference(x, residual, params)
    assert out.shape == (N, channels, H, W)
    assert jnp.max(jnp.abs(out - ref)) < 2e-4

    # Case 2: same inputs through the tiled fallback path (2 HW tiles of 128).
    out_t = jax.block_until_ready(
        aff_forward(x, residual, params, force_tiled=True, tile_hw=128))
    assert jnp.max(jnp.abs(out_t - ref)) < 2e-4

    # Case 3: HW not a multiple of 128 (14*14=196) -> padded to 256 lanes for
    # lane-dense stores, padding masked out of the in-kernel mean, cropped back.
    H2 = W2 = 14
    x2 = jax.random.normal(kx, (N, channels, H2, W2), jnp.float32)
    r2 = jax.random.normal(kr, (N, channels, H2, W2), jnp.float32)
    out2 = jax.block_until_ready(aff_forward(x2, r2, params))
    ref2 = aff_reference(x2, r2, params)
    assert out2.shape == (N, channels, H2, W2)
    assert jnp.max(jnp.abs(out2 - ref2)) < 2e-4

    print("KERNEL_OK")
</pallas_src>

<mosaic_0001>
module attributes {stable_mosaic.version = 11 : i64} {
  func.func @aff_fused_kernel(%arg0: i32, %arg1: memref<2x64x256xf32, #tpu.memory_space<vmem>>, %arg2: memref<2x64x256xf32, #tpu.memory_space<vmem>>, %arg3: memref<16x64xf32, #tpu.memory_space<vmem>>, %arg4: memref<16x1xf32, #tpu.memory_space<vmem>>, %arg5: memref<64x16xf32, #tpu.memory_space<vmem>>, %arg6: memref<16x64xf32, #tpu.memory_space<vmem>>, %arg7: memref<16x1xf32, #tpu.memory_space<vmem>>, %arg8: memref<64x16xf32, #tpu.memory_space<vmem>>, %arg9: memref<64x1xf32, #tpu.memory_space<vmem>>, %arg10: memref<2x64x256xf32, #tpu.memory_space<vmem>>) attributes {dimension_semantics = [#tpu.dimension_semantics<parallel>], iteration_bounds = array<i64: 1>, scalar_prefetch = 0 : i64, scratch_operands = 0 : i64, tpu.core_type = #tpu.core_type<tc>, window_params = [{transform_indices = @transform_0, window_bounds = array<i64: 2, 64, 256>}, {transform_indices = @transform_1, window_bounds = array<i64: 2, 64, 256>}, {pipeline_mode = #tpu.pipeline_mode<synchronous>, transform_indices = @transform_2, window_bounds = array<i64: 16, 64>}, {pipeline_mode = #tpu.pipeline_mode<synchronous>, transform_indices = @transform_3, window_bounds = array<i64: 16, 1>}, {pipeline_mode = #tpu.pipeline_mode<synchronous>, transform_indices = @transform_4, window_bounds = array<i64: 64, 16>}, {pipeline_mode = #tpu.pipeline_mode<synchronous>, transform_indices = @transform_5, window_bounds = array<i64: 16, 64>}, {pipeline_mode = #tpu.pipeline_mode<synchronous>, transform_indices = @transform_6, window_bounds = array<i64: 16, 1>}, {pipeline_mode = #tpu.pipeline_mode<synchronous>, transform_indices = @transform_7, window_bounds = array<i64: 64, 16>}, {pipeline_mode = #tpu.pipeline_mode<synchronous>, transform_indices = @transform_8, window_bounds = array<i64: 64, 1>}, {transform_indices = @transform_9, window_bounds = array<i64: 2, 64, 256>}]} {
    %c0 = arith.constant 0 : index
    %c0_0 = arith.constant 0 : index
    %0 = vector.load %arg3[%c0, %c0_0] : memref<16x64xf32, #tpu.memory_space<vmem>>, vector<16x64xf32>
    %c0_1 = arith.constant 0 : index
    %c0_2 = arith.constant 0 : index
    %1 = vector.load %arg4[%c0_1, %c0_2] : memref<16x1xf32, #tpu.memory_space<vmem>>, vector<16x1xf32>
    %c0_3 = arith.constant 0 : index
    %c0_4 = arith.constant 0 : index
    %2 = vector.load %arg5[%c0_3, %c0_4] : memref<64x16xf32, #tpu.memory_space<vmem>>, vector<64x16xf32>
    %c0_5 = arith.constant 0 : index
    %c0_6 = arith.constant 0 : index
    %3 = vector.load %arg6[%c0_5, %c0_6] : memref<16x64xf32, #tpu.memory_space<vmem>>, vector<16x64xf32>
    %c0_7 = arith.constant 0 : index
    %c0_8 = arith.constant 0 : index
    %4 = vector.load %arg7[%c0_7, %c0_8] : memref<16x1xf32, #tpu.memory_space<vmem>>, vector<16x1xf32>
    %c0_9 = arith.constant 0 : index
    %c0_10 = arith.constant 0 : index
    %5 = vector.load %arg8[%c0_9, %c0_10] : memref<64x16xf32, #tpu.memory_space<vmem>>, vector<64x16xf32>
    %c0_11 = arith.constant 0 : index
    %c0_12 = arith.constant 0 : index
    %6 = vector.load %arg9[%c0_11, %c0_12] : memref<64x1xf32, #tpu.memory_space<vmem>>, vector<64x1xf32>
    %c0_13 = arith.constant 0 : index
    %c0_14 = arith.constant 0 : index
    %c0_15 = arith.constant 0 : index
    %7 = vector.load %arg1[%c0_13, %c0_14, %c0_15] : memref<2x64x256xf32, #tpu.memory_space<vmem>>, vector<1x64x256xf32>
    %8 = vector.shape_cast %7 : vector<1x64x256xf32> to vector<64x256xf32>
    %c0_16 = arith.constant 0 : index
    %c0_17 = arith.constant 0 : index
    %c0_18 = arith.constant 0 : index
    %9 = vector.load %arg2[%c0_16, %c0_17, %c0_18] : memref<2x64x256xf32, #tpu.memory_space<vmem>>, vector<1x64x256xf32>
    %10 = vector.shape_cast %9 : vector<1x64x256xf32> to vector<64x256xf32>
    %11 = arith.addf %8, %10 : vector<64x256xf32>
    %cst = arith.constant dense<0.000000e+00> : vector<64xf32>
    %12 = vector.multi_reduction <add>, %11, %cst [1] : vector<64x256xf32> to vector<64xf32>
    %13 = vector.shape_cast %12 : vector<64xf32> to vector<64x1xf32>
    %cst_19 = arith.constant 3.906250e-03 : f32
    %14 = vector.broadcast %cst_19 : f32 to vector<64x1xf32>
    %15 = arith.mulf %13, %14 : vector<64x1xf32>
    %cst_20 = arith.constant dense<0.000000e+00> : vector<16x1xf32>
    %16 = tpu.matmul %3, %15, %cst_20 {dimension_numbers = #tpu.dot_dimension_numbers<[1], [0], [0], [1], [0, 0, 1, 1], [], []>} : vector<16x64xf32>, vector<64x1xf32>, vector<16x1xf32> -> vector<16x1xf32>
    %17 = arith.addf %16, %4 : vector<16x1xf32>
    %cst_21 = arith.constant 0.000000e+00 : f32
    %18 = vector.broadcast %cst_21 : f32 to vector<16x1xf32>
    %19 = arith.maximumf %17, %18 : vector<16x1xf32>
    %cst_22 = arith.constant dense<0.000000e+00> : vector<64x1xf32>
    %20 = tpu.matmul %5, %19, %cst_22 {dimension_numbers = #tpu.dot_dimension_numbers<[1], [0], [0], [1], [0, 0, 1, 1], [], []>} : vector<64x16xf32>, vector<16x1xf32>, vector<64x1xf32> -> vector<64x1xf32>
    %21 = arith.addf %20, %6 : vector<64x1xf32>
    %cst_23 = arith.constant dense<0.000000e+00> : vector<16x256xf32>
    %22 = tpu.matmul %0, %11, %cst_23 {dimension_numbers = #tpu.dot_dimension_numbers<[1], [0], [0], [1], [0, 0, 1, 1], [], []>} : vector<16x64xf32>, vector<64x256xf32>, vector<16x256xf32> -> vector<16x256xf32>
    %23 = vector.broadcast %1 : vector<16x1xf32> to vector<16x256xf32>
    %24 = arith.addf %22, %23 : vector<16x256xf32>
    %cst_24 = arith.constant 0.000000e+00 : f32
    %25 = vector.broadcast %cst_24 : f32 to vector<16x256xf32>
    %26 = arith.maximumf %24, %25 : vector<16x256xf32>
    %cst_25 = arith.constant dense<0.000000e+00> : vector<64x256xf32>
    %27 = tpu.matmul %2, %26, %cst_25 {dimension_numbers = #tpu.dot_dimension_numbers<[1], [0], [0], [1], [0, 0, 1, 1], [], []>} : vector<64x16xf32>, vector<16x256xf32>, vector<64x256xf32> -> vector<64x256xf32>
    %28 = vector.broadcast %21 : vector<64x1xf32> to vector<64x256xf32>
    %29 = arith.addf %27, %28 : vector<64x256xf32>
    %30 = math.tanh %29 : vector<64x256xf32>
    %31 = arith.subf %8, %10 : vector<64x256xf32>
    %32 = arith.mulf %30, %31 : vector<64x256xf32>
    %33 = arith.addf %11, %32 : vector<64x256xf32>
    %c0_26 = arith.constant 0 : index
    %c0_27 = arith.constant 0 : index
    %c0_28 = arith.constant 0 : index
    %34 = vector.load %arg10[%c0_26, %c0_27, %c0_28] : memref<2x64x256xf32, #tpu.memory_space<vmem>>, vector<1x64x256xf32>
    %35 = vector.shape_cast %34 : vector<1x64x256xf32> to vector<64x256xf32>
    %36 = vector.shape_cast %33 : vector<64x256xf32> to vector<1x64x256xf32>
    tpu.vector_store %arg10[%c0_26, %c0_27, %c0_28], %36 {strides = array<i32>} : memref<2x64x256xf32, #tpu.memory_space<vmem>>, vector<1x64x256xf32>,
    %c1 = arith.constant 1 : index
    %c0_29 = arith.constant 0 : index
    %c0_30 = arith.constant 0 : index
    %37 = vector.load %arg1[%c1, %c0_29, %c0_30] : memref<2x64x256xf32, #tpu.memory_space<vmem>>, vector<1x64x256xf32>
    %38 = vector.shape_cast %37 : vector<1x64x256xf32> to vector<64x256xf32>
    %c1_31 = arith.constant 1 : index
    %c0_32 = arith.constant 0 : index
    %c0_33 = arith.constant 0 : index
    %39 = vector.load %arg2[%c1_31, %c0_32, %c0_33] : memref<2x64x256xf32, #tpu.memory_space<vmem>>, vector<1x64x256xf32>
    %40 = vector.shape_cast %39 : vector<1x64x256xf32> to vector<64x256xf32>
    %41 = arith.addf %38, %40 : vector<64x256xf32>
    %cst_34 = arith.constant dense<0.000000e+00> : vector<64xf32>
    %42 = vector.multi_reduction <add>, %41, %cst_34 [1] : vector<64x256xf32> to vector<64xf32>
    %43 = vector.shape_cast %42 : vector<64xf32> to vector<64x1xf32>
    %cst_35 = arith.constant 3.906250e-03 : f32
    %44 = vector.broadcast %cst_35 : f32 to vector<64x1xf32>
    %45 = arith.mulf %43, %44 : vector<64x1xf32>
    %cst_36 = arith.constant dense<0.000000e+00> : vector<16x1xf32>
    %46 = tpu.matmul %3, %45, %cst_36 {dimension_numbers = #tpu.dot_dimension_numbers<[1], [0], [0], [1], [0, 0, 1, 1], [], []>} : vector<16x64xf32>, vector<64x1xf32>, vector<16x1xf32> -> vector<16x1xf32>
    %47 = arith.addf %46, %4 : vector<16x1xf32>
    %cst_37 = arith.constant 0.000000e+00 : f32
    %48 = vector.broadcast %cst_37 : f32 to vector<16x1xf32>
    %49 = arith.maximumf %47, %48 : vector<16x1xf32>
    %cst_38 = arith.constant dense<0.000000e+00> : vector<64x1xf32>
    %50 = tpu.matmul %5, %49, %cst_38 {dimension_numbers = #tpu.dot_dimension_numbers<[1], [0], [0], [1], [0, 0, 1, 1], [], []>} : vector<64x16xf32>, vector<16x1xf32>, vector<64x1xf32> -> vector<64x1xf32>
    %51 = arith.addf %50, %6 : vector<64x1xf32>
    %cst_39 = arith.constant dense<0.000000e+00> : vector<16x256xf32>
    %52 = tpu.matmul %0, %41, %cst_39 {dimension_numbers = #tpu.dot_dimension_numbers<[1], [0], [0], [1], [0, 0, 1, 1], [], []>} : vector<16x64xf32>, vector<64x256xf32>, vector<16x256xf32> -> vector<16x256xf32>
    %53 = vector.broadcast %1 : vector<16x1xf32> to vector<16x256xf32>
    %54 = arith.addf %52, %53 : vector<16x256xf32>
    %cst_40 = arith.constant 0.000000e+00 : f32
    %55 = vector.broadcast %cst_40 : f32 to vector<16x256xf32>
    %56 = arith.maximumf %54, %55 : vector<16x256xf32>
    %cst_41 = arith.constant dense<0.000000e+00> : vector<64x256xf32>
    %57 = tpu.matmul %2, %56, %cst_41 {dimension_numbers = #tpu.dot_dimension_numbers<[1], [0], [0], [1], [0, 0, 1, 1], [], []>} : vector<64x16xf32>, vector<16x256xf32>, vector<64x256xf32> -> vector<64x256xf32>
    %58 = vector.broadcast %51 : vector<64x1xf32> to vector<64x256xf32>
    %59 = arith.addf %57, %58 : vector<64x256xf32>
    %60 = math.tanh %59 : vector<64x256xf32>
    %61 = arith.subf %38, %40 : vector<64x256xf32>
    %62 = arith.mulf %60, %61 : vector<64x256xf32>
    %63 = arith.addf %41, %62 : vector<64x256xf32>
    %c1_42 = arith.constant 1 : index
    %c0_43 = arith.constant 0 : index
    %c0_44 = arith.constant 0 : index
    %64 = vector.load %arg10[%c1_42, %c0_43, %c0_44] : memref<2x64x256xf32, #tpu.memory_space<vmem>>, vector<1x64x256xf32>
    %65 = vector.shape_cast %64 : vector<1x64x256xf32> to vector<64x256xf32>
    %66 = vector.shape_cast %63 : vector<64x256xf32> to vector<1x64x256xf32>
    tpu.vector_store %arg10[%c1_42, %c0_43, %c0_44], %66 {strides = array<i32>} : memref<2x64x256xf32, #tpu.memory_space<vmem>>, vector<1x64x256xf32>,
    return
  }
  func.func @transform_0(%arg0: i32) -> (i32, i32, i32) {
    %c0_i32 = arith.constant 0 : i32
    %c0_i32_0 = arith.constant 0 : i32
    %c0_i32_1 = arith.constant 0 : i32
    return %arg0, %c0_i32, %c0_i32_0 : i32, i32, i32
  }
  func.func @transform_1(%arg0: i32) -> (i32, i32, i32) {
    %c0_i32 = arith.constant 0 : i32
    %c0_i32_0 = arith.constant 0 : i32
    %c0_i32_1 = arith.constant 0 : i32
    return %arg0, %c0_i32, %c0_i32_0 : i32, i32, i32
  }
  func.func @transform_2(%arg0: i32) -> (i32, i32) {
    %c0_i32 = arith.constant 0 : i32
    %c0_i32_0 = arith.constant 0 : i32
    %c0_i32_1 = arith.constant 0 : i32
    return %c0_i32, %c0_i32_0 : i32, i32
  }
  func.func @transform_3(%arg0: i32) -> (i32, i32) {
    %c0_i32 = arith.constant 0 : i32
    %c0_i32_0 = arith.constant 0 : i32
    %c0_i32_1 = arith.constant 0 : i32
    return %c0_i32, %c0_i32_0 : i32, i32
  }
  func.func @transform_4(%arg0: i32) -> (i32, i32) {
    %c0_i32 = arith.constant 0 : i32
    %c0_i32_0 = arith.constant 0 : i32
    %c0_i32_1 = arith.constant 0 : i32
    return %c0_i32, %c0_i32_0 : i32, i32
  }
  func.func @transform_5(%arg0: i32) -> (i32, i32) {
    %c0_i32 = arith.constant 0 : i32
    %c0_i32_0 = arith.constant 0 : i32
    %c0_i32_1 = arith.constant 0 : i32
    return %c0_i32, %c0_i32_0 : i32, i32
  }
  func.func @transform_6(%arg0: i32) -> (i32, i32) {
    %c0_i32 = arith.constant 0 : i32
    %c0_i32_0 = arith.constant 0 : i32
    %c0_i32_1 = arith.constant 0 : i32
    return %c0_i32, %c0_i32_0 : i32, i32
  }
  func.func @transform_7(%arg0: i32) -> (i32, i32) {
    %c0_i32 = arith.constant 0 : i32
    %c0_i32_0 = arith.constant 0 : i32
    %c0_i32_1 = arith.constant 0 : i32
    return %c0_i32, %c0_i32_0 : i32, i32
  }
  func.func @transform_8(%arg0: i32) -> (i32, i32) {
    %c0_i32 = arith.constant 0 : i32
    %c0_i32_0 = arith.constant 0 : i32
    %c0_i32_1 = arith.constant 0 : i32
    return %c0_i32, %c0_i32_0 : i32, i32
  }
  func.func @transform_9(%arg0: i32) -> (i32, i32, i32) {
    %c0_i32 = arith.constant 0 : i32
    %c0_i32_0 = arith.constant 0 : i32
    %c0_i32_1 = arith.constant 0 : i32
    return %arg0, %c0_i32, %c0_i32_0 : i32, i32, i32
  }
}

</mosaic_0001>

<bundles_post_ra>
// kernel: tpu_custom_call.1
= control target key start
LH: loop header
LB: loop body
LE: loop exit
PB: predicated region body
PF: predicated region fallthrough
CT: control target
= control target key end

     0   :  { %14 = vsyncpa [#allocation3], 0  ;;  %s2722_s0 = inlined_call_operand.vmem [shape: f32[2,64,256], index: 0, kind: input, shape index: {}]   ;;  %s2723_s1 = inlined_call_operand.hbm [shape: f32[2,64,256], index: 1, kind: input, shape index: {}]   ;;  %s2724_s2 = inlined_call_operand.hbm [shape: f32[16,64], index: 2, kind: input, shape index: {}]   ;;  %s2725_s3 = inlined_call_operand.vmem [shape: f32[16,1], index: 3, kind: input, shape index: {}]   ;;  %s2726_s4 = inlined_call_operand.vmem [shape: f32[64,16], index: 4, kind: input, shape index: {}]   ;;  %s2727_s5 = inlined_call_operand.vmem [shape: f32[16,64], index: 5, kind: input, shape index: {}]   ;;  %s2728_s6 = inlined_call_operand.vmem [shape: f32[16,1], index: 6, kind: input, shape index: {}]   ;;  %s2729_s7 = inlined_call_operand.vmem [shape: f32[64,16], index: 7, kind: input, shape index: {}]   ;;  %s2730_s8 = inlined_call_operand.vmem [shape: f32[64,1], index: 8, kind: input, shape index: {}]   ;;  %s2731_s9 = inlined_call_operand.hbm [shape: f32[2,64,256], index: 9, kind: output, shape index: {}]  }
   0x1   :  { %15 = vsyncpa [#allocation6], 0 }
   0x2   :  { %16 = vsyncpa [#allocation4], 0  ;;  %s1731_s30 = smov [#allocation2]   ;;  %s1659_s13 = scalar_lea.hbm %s2723_s1, 4096 }
   0x3   :  { %s24_s10 = sshll.u32 %s1731_s30, 4  ;;  %p1660_p0 = scmp.ne.s32.totalorder %s2723_s1, %s1659_s13  ;;  %s25_s10 = int_to_ptr.vmem [resolvable:$true] %s24_s10 }
   0x4   :  { %p1663_p1 = scmp.lt.u32.totalorder %s1659_s13, %s2723_s1 }
   0x6   :  { %p1665_p2 = pnand %p1663_p1, %p1660_p0 }
   0x8   :  { %1668 = shalt.err (!%p1665_p2)
}
   0x9   :  { %s1669_s18 = scalar_lea.vmem %s25_s10, 4096  ;;  %p1674_p4 = scmp.lt.s32.totalorder %s25_s10, %s25_s10 }
   0xa   :  { %p1670_p3 = scmp.ne.s32.totalorder %s25_s10, %s1669_s18  ;;  %p1675_p5 = scmp.lt.s32.totalorder %s1669_s18, %s1669_s18 }
   0xc   :  { %p1676_p6 = por %p1675_p5, %p1674_p4 }
   0xe   :  { %p1677_p7 = pnand %p1676_p6, %p1670_p3 }
  0x10   :  { %1680 = shalt.err (!%p1677_p7)
}
  0x11   :  { %s1732_s19 = smov 256   ;;  %s1733_s20 = smov 16  }
  0x12   :  { %30 = dma.hbm_to_vmem [thread:$0]  %s2723_s1, 4096, %s25_s10, [#allocation3], %s1732_s19, %s1732_s19, %s1733_s20  }
  0x13   :  { %s1734_s23 = smov [#allocation5]   ;;  %s1681_s27 = scalar_lea.hbm %s2724_s2, 256 }
  0x14   :  { %s36_s24 = sshll.u32 %s1734_s23, 4  ;;  %p1682_p8 = scmp.ne.s32.totalorder %s2724_s2, %s1681_s27  ;;  %s37_s24 = int_to_ptr.vmem [resolvable:$true] %s36_s24 }
  0x15   :  { %p1685_p9 = scmp.lt.u32.totalorder %s1681_s27, %s2724_s2 }
  0x17   :  { %p1687_p10 = pnand %p1685_p9, %p1682_p8 }
  0x19   :  { %1690 = shalt.err (!%p1687_p10)
}
  0x1a   :  { %s1691_s12 = scalar_lea.vmem %s37_s24, 256  ;;  %p1696_p12 = scmp.lt.s32.totalorder %s37_s24, %s37_s24 }
  0x1b   :  { %p1692_p11 = scmp.ne.s32.totalorder %s37_s24, %s1691_s12  ;;  %p1697_p13 = scmp.lt.s32.totalorder %s1691_s12, %s1691_s12 }
  0x1d   :  { %p1698_p0 = por %p1697_p13, %p1696_p12 }
  0x1f   :  { %p1699_p1 = pnand %p1698_p0, %p1692_p11 }
  0x21   :  { %1702 = shalt.err (!%p1699_p1)
}
  0x22   :  { %s1735_s1 = smov 128   ;;  %s1736_s10 = smov 8  }
  0x23   :  { %42 = dma.hbm_to_vmem [thread:$0]  %s2724_s2, 256, %s37_s24, [#allocation6], %s1735_s1, %s1735_s1, %s1736_s10  }
  0x24   :  { %1725 = dma.done.wait [#allocation3], 4096  }
  0x25   :  { %1726 = vsyncadd [#allocation3], 4294963200 }
  0x26   :  { %1727 = dma.done.wait [#allocation6], 256  }
  0x27   :  { %1728 = vsyncadd [#allocation6], 4294967040  ;;  %v1820_v0 = vld [vmem:[%s2722_s0 + $0x20] sm:$0xff]  ;;  %v1825_v1 = vld [vmem:[%s2722_s0 + $0x28] sm:$0xff]  ;;  %vm173_vm0 = vcmask 523264   ;;  %vm257_vm1 = vcmask 130048  }
  0x28   :  { %2815 = vst [vmem:[#allocation11_spill] sm:$0xff] %v1820_v0  ;;  %2816 = vst [vmem:[#allocation12_spill] sm:$0xff] %v1825_v1  ;;  %v1827_v2 = vld [vmem:[#allocation2 + $0x20] sm:$0xff]  ;;  %v1829_v3 = vld [vmem:[#allocation2 + $0x28] sm:$0xff] }
  0x29   :  { %2817 = vst [vmem:[#allocation13_spill] sm:$0xff] %v1827_v2  ;;  %2818 = vst [vmem:[#allocation14_spill] sm:$0xff] %v1829_v3  ;;  %v1833_v4 = vadd.f32 %v1827_v2, %v1820_v0  ;;  %v1840_v6 = vld [vmem:[%s2722_s0] sm:$0xff]  ;;  %v1845_v7 = vld [vmem:[%s2722_s0 + $0x8] sm:$0xff]  ;;  %v1849_v8 = vadd.f32 %v1829_v3, %v1825_v1 }
  0x2a   :  { %v1853_v10 = vld [vmem:[#allocation2] sm:$0xff]  ;;  %v1855_v11 = vld [vmem:[#allocation2 + $0x8] sm:$0xff]  ;;  %v1860_v12 = vld [vmem:[%s2722_s0 + $0x30] sm:$0xff] }
  0x2b   :  { %2819 = vst [vmem:[#allocation15_spill] sm:$0xff] %v1860_v12  ;;  %v1864_v13 = vadd.f32 %v1853_v10, %v1840_v6  ;;  %v1868_v14 = vadd.f32 %v1855_v11, %v1845_v7  ;;  %v1877_v17 = vld [vmem:[%s2722_s0 + $0x38] sm:$0xff]  ;;  %v1879_v18 = vld [vmem:[#allocation2 + $0x30] sm:$0xff]  ;;  %v147_v20 = vadd.f32 %v1849_v8, %v1833_v4  ;;  %v1944_v39 = vld [vmem:[%s2722_s0 + $0x40] sm:$0xff] }
  0x2c   :  { %2820 = vst [vmem:[#allocation16_spill] sm:$0xff] %v1877_v17  ;;  %2821 = vst [vmem:[#allocation17_spill] sm:$0xff] %v1879_v18  ;;  %v1881_v19 = vld [vmem:[#allocation2 + $0x38] sm:$0xff]  ;;  %v1887_v21 = vadd.f32 %v1879_v18, %v1860_v12  ;;  %v1898_v24 = vld [vmem:[%s2722_s0 + $0x10] sm:$0xff] }
  0x2d   :  { %2822 = vst [vmem:[#allocation18_spill] sm:$0xff] %v1881_v19  ;;  %v1891_v22 = vadd.f32 %v1881_v19, %v1877_v17  ;;  %v1903_v25 = vld [vmem:[%s2722_s0 + $0x18] sm:$0xff]  ;;  %v1905_v26 = vld [vmem:[#allocation2 + $0x10] sm:$0xff]  ;;  %v141_v27 = vadd.f32 %v1868_v14, %v1864_v13  ;;  %148 = vadd.xlane.f32.xlu1 %v147_v20  ;;  %2828 = vst [vmem:[#allocation24_spill] sm:$0xff] %v1944_v39 }
  0x2e   :  { %v1911_v29 = vld [vmem:[#allocation2 + $0x18] sm:$0xff]  ;;  %v1915_v30 = vadd.f32 %v1905_v26, %v1898_v24  ;;  %v1922_v32 = vld [vmem:[%s2722_s0 + $0x50] sm:$0xff]  ;;  %v1961_v44 = vld [vmem:[%s2722_s0 + $0x48] sm:$0xff] }
  0x2f   :  { %2823 = vst [vmem:[#allocation19_spill] sm:$0xff] %v1911_v29  ;;  %2824 = vst [vmem:[#allocation20_spill] sm:$0xff] %v1922_v32  ;;  %v1927_v33 = vld [vmem:[%s2722_s0 + $0x58] sm:$0xff]  ;;  %v150_v34 = vadd.f32 %v1891_v22, %v1887_v21  ;;  %v1933_v35 = vadd.f32 %v1911_v29, %v1903_v25  ;;  %v1937_v37 = vld [vmem:[#allocation2 + $0x50] sm:$0xff]  ;;  %142 = vadd.xlane.f32.xlu0 %v141_v27 }
  0x30   :  { %2825 = vst [vmem:[#allocation21_spill] sm:$0xff] %v1927_v33  ;;  %2826 = vst [vmem:[#allocation22_spill] sm:$0xff] %v1937_v37  ;;  %v1939_v38 = vld [vmem:[#allocation2 + $0x58] sm:$0xff]  ;;  %v1948_v40 = vadd.f32 %v1937_v37, %v1922_v32  ;;  %v1963_v45 = vld [vmem:[#allocation2 + $0x40] sm:$0xff] }
  0x31   :  { %2827 = vst [vmem:[#allocation23_spill] sm:$0xff] %v1939_v38  ;;  %v1952_v41 = vadd.f32 %v1939_v38, %v1927_v33  ;;  %2831 = vst [vmem:[#allocation27_spill] sm:$0xff] %v1961_v44  ;;  %v1965_v46 = vld [vmem:[#allocation2 + $0x48] sm:$0xff]  ;;  %v144_v47 = vadd.f32 %v1933_v35, %v1915_v30  ;;  %v1971_v48 = vadd.f32 %v1963_v45, %v1944_v39  ;;  %v1982_v51 = vld [vmem:[%s2722_s0 + $0x70] sm:$0xff]  ;;  %151 = vadd.xlane.f32.xlu1 %v150_v34 }
  0x32   :  { %2829 = vst [vmem:[#allocation25_spill] sm:$0xff] %v1948_v40  ;;  %2832 = vst [vmem:[#allocation28_spill] sm:$0xff] %v1963_v45  ;;  %v1975_v49 = vadd.f32 %v1965_v46, %v1961_v44  ;;  %v1987_v52 = vld [vmem:[%s2722_s0 + $0x78] sm:$0xff]  ;;  %v1989_v53 = vld [vmem:[#allocation2 + $0x70] sm:$0xff] }
  0x33   :  { %2830 = vst [vmem:[#allocation26_spill] sm:$0xff] %v1952_v41  ;;  %2833 = vst [vmem:[#allocation29_spill] sm:$0xff] %v1965_v46  ;;  %v156_v54 = vadd.f32 %v1952_v41, %v1948_v40  ;;  %v1995_v56 = vld [vmem:[#allocation2 + $0x78] sm:$0xff]  ;;  %v2002_v58 = vld [vmem:[%s2722_s0 + $0x60] sm:$0xff]  ;;  %v2013_v61 = vadd.f32 %v1989_v53, %v1982_v51  ;;  %145 = vadd.xlane.f32.xlu0 %v144_v47 }
  0x34   :  { %2834 = vst [vmem:[#allocation30_spill] sm:$0xff] %v1975_v49  ;;  %2835 = vst [vmem:[#allocation31_spill] sm:$0xff] %v1982_v51  ;;  %v2007_v59 = vld [vmem:[%s2722_s0 + $0x68] sm:$0xff]  ;;  %v153_v60 = vadd.f32 %v1975_v49, %v1971_v48  ;;  %v2017_v62 = vadd.f32 %v1995_v56, %v1987_v52  ;;  %v2021_v20 = vld [vmem:[#allocation2 + $0x60] sm:$0xff] }
  0x35   :  { %2836 = vst [vmem:[#allocation32_spill] sm:$0xff] %v1987_v52  ;;  %2837 = vst [vmem:[#allocation33_spill] sm:$0xff] %v1989_v53  ;;  %v2023_v27 = vld [vmem:[#allocation2 + $0x68] sm:$0xff]  ;;  %v2027_v34 = vadd.f32 %v2021_v20, %v2002_v58  ;;  %157 = vadd.xlane.f32.xlu1 %v156_v54  ;;  %v2044_v55 = vld [vmem:[%s2727_s5] sm:$0xff] }
  0x36   :  { %2838 = vst [vmem:[#allocation34_spill] sm:$0xff] %v1995_v56  ;;  %2839 = vst [vmem:[#allocation35_spill] sm:$0xff] %v2002_v58  ;;  %v2031_v57 = vadd.f32 %v2023_v27, %v2007_v59  ;;  %v162_v63 = vadd.f32 %v2017_v62, %v2013_v61  ;;  %1450 = vmatprep.mubr.msk.f32.mxu0 %vm173_vm0, %v2044_v55  ;;  %v2151_v58 = vld [vmem:[%s2722_s0 + $0xc8] sm:$0xff]  ;;  %v2160_v33 = vld [vmem:[%s2722_s0 + $0xd0] sm:$0xff] }
  0x37   :  { %2840 = vst [vmem:[#allocation36_spill] sm:$0xff] %v2007_v59  ;;  %2841 = vst [vmem:[#allocation37_spill] sm:$0xff] %v2013_v61  ;;  %154 = vadd.xlane.f32.xlu0 %v153_v60  ;;  %v2144_v59 = vld [vmem:[#allocation2 + $0xc0] sm:$0xff]  ;;  %v2153_v38 = vld [vmem:[#allocation2 + $0xc8] sm:$0xff] }
  0x38   :  { %2842 = vst [vmem:[#allocation38_spill] sm:$0xff] %v2017_v62  ;;  %2843 = vst [vmem:[#allocation39_spill] sm:$0xff] %v2021_v20  ;;  %v159_v47 = vadd.f32 %v2031_v57, %v2027_v34  ;;  %v2167_v20 = vld [vmem:[%s2722_s0 + $0xd8] sm:$0xff]  ;;  %v2169_v32 = vld [vmem:[#allocation2 + $0xd0] sm:$0xff] }
  0x39   :  { %2844 = vst [vmem:[#allocation40_spill] sm:$0xff] %v2023_v27  ;;  %2845 = vst [vmem:[#allocation41_spill] sm:$0xff] %v2027_v34  ;;  %163 = vadd.xlane.f32.xlu1 %v162_v63  ;;  %v2171_v46 = vld [vmem:[#allocation2 + $0xd8] sm:$0xff]  ;;  %v2180_v45 = vld [vmem:[%s2722_s0 + $0xe0] sm:$0xff] }
  0x3a   :  { %2846 = vst [vmem:[#allocation42_spill] sm:$0xff] %v2031_v57  ;;  %2864 = vst [vmem:[#allocation60_spill] sm:$0xff] %v2144_v59  ;;  %v2185_v37 = vld [vmem:[%s2722_s0 + $0xe8] sm:$0xff]  ;;  %v2187_v39 = vld [vmem:[#allocation2 + $0xe0] sm:$0xff] }
  0x3b   :  { %160 = vadd.xlane.f32.xlu0 %v159_v47  ;;  %2865 = vst [vmem:[#allocation61_spill] sm:$0xff] %v2151_v58  ;;  %2866 = vst [vmem:[#allocation62_spill] sm:$0xff] %v2153_v38  ;;  %v2189_v19 = vld [vmem:[#allocation2 + $0xe8] sm:$0xff]  ;;  %v2196_v44 = vld [vmem:[%s2722_s0 + $0xf0] sm:$0xff] }
  0x3c   :  { %2867 = vst [vmem:[#allocation63_spill] sm:$0xff] %v2160_v33  ;;  %2868 = vst [vmem:[#allocation64_spill] sm:$0xff] %v2167_v20  ;;  %v2198_v17 = vld [vmem:[#allocation2 + $0xf0] sm:$0xff]  ;;  %v2205_v12 = vld [vmem:[%s2722_s0 + $0xf8] sm:$0xff] }
  0x3d   :  { %2869 = vst [vmem:[#allocation65_spill] sm:$0xff] %v2169_v32  ;;  %2870 = vst [vmem:[#allocation66_spill] sm:$0xff] %v2171_v46  ;;  %v2207_v3 = vld [vmem:[#allocation2 + $0xf8] sm:$0xff] }
  0x3e   :  { %2871 = vst [vmem:[#allocation67_spill] sm:$0xff] %v2180_v45  ;;  %2872 = vst [vmem:[#allocation68_spill] sm:$0xff] %v2185_v37 }
  0x3f   :  { %2873 = vst [vmem:[#allocation69_spill] sm:$0xff] %v2187_v39  ;;  %2874 = vst [vmem:[#allocation70_spill] sm:$0xff] %v2189_v19 }
  0x40   :  { %2875 = vst [vmem:[#allocation71_spill] sm:$0xff] %v2196_v44  ;;  %2876 = vst [vmem:[#allocation72_spill] sm:$0xff] %v2198_v17 }
  0x41   :  { %2877 = vst [vmem:[#allocation73_spill] sm:$0xff] %v2205_v12  ;;  %2878 = vst [vmem:[#allocation74_spill] sm:$0xff] %v2207_v3 }
  0xba   :  { %v149_v42 = vpop.xlane.xlu1 %148 }
  0xbb   :  { %v167_v28 = vmul.f32 0.00390625, %v149_v42  ;;  %v2079_v42 = vld [vmem:[#allocation2 + $0x80] sm:$0xff] }
  0xbc   :  { %v143_v54 = vpop.xlane.xlu0 %142  ;;  %2849 = vst [vmem:[#allocation45_spill] sm:$0xff] %v2079_v42 }
  0xbd   :  { %v165_v60 = vmul.f32 0.00390625, %v143_v54  ;;  %v2142_v54 = vld [vmem:[%s2722_s0 + $0xc0] sm:$0xff] }
  0xbe   :  { %v152_v43 = vpop.xlane.xlu1 %151  ;;  %2863 = vst [vmem:[#allocation59_spill] sm:$0xff] %v2142_v54 }
  0xbf   :  { %v168_v23 = vmul.f32 0.00390625, %v152_v43  ;;  %v2081_v43 = vld [vmem:[#allocation2 + $0x88] sm:$0xff] }
  0xc0   :  { %v146_v50 = vpop.xlane.xlu0 %145  ;;  %2850 = vst [vmem:[#allocation46_spill] sm:$0xff] %v2081_v43 }
  0xc1   :  { %v166_v9 = vmul.f32 0.00390625, %v146_v50  ;;  %v1508_v31 = vpack.c.bf16 %v168_v23, %v167_v28  ;;  %v63_v23 = vld [vmem:[%s2725_s3] sm:$0xff]  ;;  %v1738_v28 = vmov 0   ;;  %v2133_v50 = vld [vmem:[#allocation2 + $0xb0] sm:$0xff] }
  0xc2   :  { %v158_v63 = vpop.xlane.xlu1 %157  ;;  %1594 = vset.pattern.permute.xlu1 %v1738_v28  ;;  %1593 = vset.pattern.permute.xlu0 %v1738_v28  ;;  %2861 = vst [vmem:[#allocation57_spill] sm:$0xff] %v2133_v50 }
  0xc3   :  { %v1504_v5 = vpack.c.bf16 %v166_v9, %v165_v60  ;;  %v170_v47 = vmul.f32 0.00390625, %v158_v63  ;;  %v2051_v9 = vld [vmem:[%s2727_s5 + $0x8] sm:$0xff]  ;;  %389 = vperm.xlu0 %1593, %v63_v23   ;;  %v2106_v60 = vld [vmem:[%s2722_s0 + $0x90] sm:$0xff]  ;;  %v2117_v23 = vld [vmem:[#allocation2 + $0x98] sm:$0xff] }
  0xc4   :  { %v155_v36 = vpop.xlane.xlu0 %154  ;;  %2855 = vst [vmem:[#allocation51_spill] sm:$0xff] %v2106_v60  ;;  %2858 = vst [vmem:[#allocation54_spill] sm:$0xff] %v2117_v23  ;;  %v2131_v63 = vld [vmem:[%s2722_s0 + $0xb8] sm:$0xff] }
  0xc5   :  { %1505 = vmatprep.subr.bf16.mxu0 %v1504_v5  ;;  %v169_v16 = vmul.f32 0.00390625, %v155_v36  ;;  %v2077_v36 = vld [vmem:[%s2722_s0 + $0x88] sm:$0xff]  ;;  %2860 = vst [vmem:[#allocation56_spill] sm:$0xff] %v2131_v63 }
  0xc6   :  { %1507 = vmatpush3.bf16.msra.mxu0 %v1504_v5  ;;  %v164_v56 = vpop.xlane.xlu1 %163  ;;  %v2058_v5 = vld [vmem:[%s2729_s7] sm:$0xff]  ;;  %2848 = vst [vmem:[#allocation44_spill] sm:$0xff] %v2077_v36  ;;  %v2229_v28 = vadd.f32 %v2077_v36, %v2081_v43 }
  0xc7   :  { %1509 = vmatprep.subr.bf16.mxu0 %v1508_v31  ;;  %v1512_v15 = vpack.c.bf16 %v170_v47, %v169_v16  ;;  %v172_v52 = vmul.f32 0.00390625, %v164_v56  ;;  %1457 = vmatprep.mubr.msk.f32.mxu1 %vm257_vm1, %v2058_v5  ;;  %v64_v16 = vld [vmem:[%s2725_s3 + $0x8] sm:$0xff]  ;;  %v2113_v47 = vld [vmem:[%s2722_s0 + $0x98] sm:$0xff] }
  0xc8   :  { %v161_v53 = vpop.xlane.xlu0 %160  ;;  %394 = vperm.xlu1 %1594, %v64_v16   ;;  %v2097_v56 = vld [vmem:[%s2722_s0 + $0xa8] sm:$0xff]  ;;  %2856 = vst [vmem:[#allocation52_spill] sm:$0xff] %v2113_v47  ;;  %v2115_v16 = vld [vmem:[#allocation2 + $0x90] sm:$0xff]  ;;  %v2219_v18 = vadd.f32 %v2113_v47, %v2117_v23  ;;  %v2399_v47 = vld [vmem:[%s2730_s8 + $0x18] sm:$0xff] }
  0xc9   :  { %v171_v51 = vmul.f32 0.00390625, %v161_v53  ;;  %2853 = vst [vmem:[#allocation49_spill] sm:$0xff] %v2097_v56  ;;  %2857 = vst [vmem:[#allocation53_spill] sm:$0xff] %v2115_v16  ;;  %v2126_v53 = vld [vmem:[%s2722_s0 + $0xb0] sm:$0xff]  ;;  %v2215_v2 = vadd.f32 %v2106_v60, %v2115_v16 }
  0xca   :  { %1511 = vmatpush3.bf16.msra.mxu0 %v1508_v31  ;;  %v2072_v31 = vld [vmem:[%s2722_s0 + $0x80] sm:$0xff]  ;;  %2859 = vst [vmem:[#allocation55_spill] sm:$0xff] %v2126_v53  ;;  %v2245_v43 = vadd.f32 %v2126_v53, %v2133_v50  ;;  %2891 = vst [vmem:[#allocation86_spill] sm:$0xff] %v2399_v47  ;;  %v2404_v60 = vld [vmem:[%s2730_s8 + $0x10] sm:$0xff] }
  0xcb   :  { %v1516_v27 = vpack.c.bf16 %v172_v52, %v171_v51  ;;  %1513 = vmatprep.subr.bf16.mxu0 %v1512_v15  ;;  %2847 = vst [vmem:[#allocation43_spill] sm:$0xff] %v2072_v31  ;;  %v2088_v51 = vld [vmem:[%s2722_s0 + $0xa0] sm:$0xff]  ;;  %v794_v0 = vadd.f32 %v2219_v18, %v2215_v2  ;;  %v2225_v29 = vadd.f32 %v2072_v31, %v2079_v42  ;;  %2892 = vst [vmem:[#allocation87_spill] sm:$0xff] %v2404_v60 }
  0xcc   :  { %2851 = vst [vmem:[#allocation47_spill] sm:$0xff] %v2088_v51  ;;  %v2090_v52 = vld [vmem:[#allocation2 + $0xa0] sm:$0xff] }
  0xcd   :  { %2852 = vst [vmem:[#allocation48_spill] sm:$0xff] %v2090_v52  ;;  %v791_v1 = vadd.f32 %v2229_v28, %v2225_v29  ;;  %v2235_v16 = vadd.f32 %v2088_v51, %v2090_v52  ;;  %v2265_v51 = vadd.f32 %v2160_v33, %v2169_v32  ;;  %v2888_v32 = vmov 0.0   ;;  %v2371_v33 = vld [vmem:[#allocation5] sm:$0xff] }
  0xce   :  { %1515 = vmatpush3.bf16.msra.mxu0 %v1512_v15  ;;  %v2737_v15 = vmov 0.0  }
  0xcf   :  { %1517 = vmatprep.subr.bf16.mxu0 %v1516_v27 }
  0xd2   :  { %1519 = vmatpush3.bf16.msra.mxu0 %v1516_v27  ;;  %v2099_v27 = vld [vmem:[#allocation2 + $0xa8] sm:$0xff] }
  0xd3   :  { %2854 = vst [vmem:[#allocation50_spill] sm:$0xff] %v2099_v27  ;;  %v2239_v23 = vadd.f32 %v2097_v56, %v2099_v27  ;;  %v2255_v27 = vadd.f32 %v2142_v54, %v2144_v59  ;;  %v2285_v54 = vadd.f32 %v2196_v44, %v2198_v17 }
  0xd5   :  { %1451 = vmatmul.mubr.msk.f32.vlgmr.msra.gmra.mrb[0].mxu0 %vm173_vm0, %v2051_v9  ;;  %v797_v42 = vadd.f32 %v2239_v23, %v2235_v16 }
  0xd6   :  { %612 = vmatprep.mubr.f32.mxu0 %v2737_v15  ;;  %v2135_v15 = vld [vmem:[#allocation2 + $0xb8] sm:$0xff] }
  0xd7   :  { %2862 = vst [vmem:[#allocation58_spill] sm:$0xff] %v2135_v15 }
  0xe2   :  { %795 = vadd.xlane.f32.xlu0 %v794_v0  ;;  %v2249_v0 = vadd.f32 %v2131_v63, %v2135_v15  ;;  %v2387_v15 = vld [vmem:[%s2730_s8 + $0x8] sm:$0xff]  ;;  %v2392_v63 = vld [vmem:[%s2730_s8] sm:$0xff] }
  0xe3   :  { %2889 = vst [vmem:[#allocation84_spill] sm:$0xff] %v2387_v15  ;;  %2890 = vst [vmem:[#allocation85_spill] sm:$0xff] %v2392_v63 }
  0xe4   :  { %v800_v52 = vadd.f32 %v2249_v0, %v2245_v43 }
  0xec   :  { %792 = vadd.xlane.f32.xlu1 %v791_v1  ;;  %v2259_v1 = vadd.f32 %v2151_v58, %v2153_v38  ;;  %v2275_v38 = vadd.f32 %v2180_v45, %v2187_v39 }
  0xee   :  { %v803_v56 = vadd.f32 %v2259_v1, %v2255_v27 }
  0xf0   :  { %798 = vadd.xlane.f32.xlu1 %v797_v42  ;;  %v2269_v42 = vadd.f32 %v2167_v20, %v2171_v46  ;;  %v2310_v46 = vld [vmem:[%s2729_s7 + $0x8] sm:$0xff]  ;;  %v1526_v20 = vpack.c.bf16 %v1915_v30, %v1864_v13 }
  0xf1   :  { %2881 = vst [vmem:[#allocation77_spill] sm:$0xff] %v2310_v46 }
  0xf2   :  { %v806_v59 = vadd.f32 %v2269_v42, %v2265_v51 }
  0xf4   :  { %801 = vadd.xlane.f32.xlu1 %v800_v52  ;;  %v2279_v52 = vadd.f32 %v2185_v37, %v2189_v19  ;;  %v2301_v19 = vld [vmem:[%s2728_s6] sm:$0xff] }
  0xf5   :  { %2880 = vst [vmem:[#allocation76_spill] sm:$0xff] %v2301_v19 }
  0xf6   :  { %v809_v58 = vadd.f32 %v2279_v52, %v2275_v38 }
  0xf8   :  { %804 = vadd.xlane.f32.xlu1 %v803_v56  ;;  %v2289_v56 = vadd.f32 %v2205_v12, %v2207_v3 }
  0xfa   :  { %v812_v39 = vadd.f32 %v2289_v56, %v2285_v54 }
  0xfc   :  { %807 = vadd.xlane.f32.xlu1 %v806_v59  ;;  %v2296_v59 = vld [vmem:[%s2728_s6 + $0x8] sm:$0xff] }
  0xfd   :  { %2879 = vst [vmem:[#allocation75_spill] sm:$0xff] %v2296_v59 }
 0x100   :  { %810 = vadd.xlane.f32.xlu1 %v809_v58 }
 0x104   :  { %813 = vadd.xlane.f32.xlu1 %v812_v39  ;;  %v1524_v39 = vpack.c.bf16 %v1933_v35, %v1868_v14 }
 0x1a8   :  { %v1452_v37 = vpop.f32.mrb[0].mxu0 }
 0x1a9   :  { %v252_v45 = vadd.f32 %v1452_v37, %v2296_v59  ;;  %v246_v3 = vpop.f32.mrb[1].mxu0  ;;  %v1530_v37 = vpack.c.bf16 %v1887_v21, %v1833_v4 }
 0x1aa   :  { %v247_v58 = vadd.f32 %v246_v3, %v2301_v19  ;;  %v2317_v3 = vld [vmem:[%s2729_s7 + $0x10] sm:$0xff] }
 0x1ab   :  { %v256_v12 = vmax.f32 %v252_v45, 0.0  ;;  %2882 = vst [vmem:[#allocation78_spill] sm:$0xff] %v2317_v3  ;;  %v1532_v45 = vpack.c.bf16 %v1952_v41, %v1975_v49 }
 0x1ac   :  { %v255_v17 = vmax.f32 %v247_v58, 0.0  ;;  %v1534_v58 = vpack.c.bf16 %v1948_v40, %v1971_v48 }
 0x1ae   :  { %v1520_v44 = vpack.c.bf16 %v256_v12, %v255_v17  ;;  %v1528_v12 = vpack.c.bf16 %v1891_v22, %v1849_v8  ;;  %v2328_v17 = vld [vmem:[%s2729_s7 + $0x18] sm:$0xff] }
 0x1af   :  { %2883 = vst [vmem:[#allocation79_spill] sm:$0xff] %v2328_v17 }
 0x1b0   :  { %1521 = vmatprep.subr.bf16.mxu1 %v1520_v44 }
 0x1b1   :  { %1523 = vmatpush3.bf16.msra.mxu1 %v1520_v44  ;;  %v2335_v44 = vld [vmem:[%s2729_s7 + $0x20] sm:$0xff] }
 0x1b2   :  { %1525 = vmatprep.subr.bf16.mxu1 %v1524_v39  ;;  %2884 = vst [vmem:[#allocation80_spill] sm:$0xff] %v2335_v44  ;;  %v2353_v39 = vld [vmem:[%s2729_s7 + $0x30] sm:$0xff] }
 0x1b3   :  { %2886 = vst [vmem:[#allocation82_spill] sm:$0xff] %v2353_v39 }
 0x1b4   :  { %1458 = vmatmul.mubr.msk.f32.vlgmr.msra.gmra.mrb[0].mxu1 %vm257_vm1, %v2310_v46 }
 0x1b5   :  { %1527 = vmatpush1.bf16.msra.mxu1 %v1526_v20  ;;  %1460 = vmatprep.mubr.msk.f32.mxu1 %vm257_vm1, %v2317_v3  ;;  %v2346_v20 = vld [vmem:[%s2729_s7 + $0x28] sm:$0xff] }
 0x1b6   :  { %1529 = vmatprep.subr.bf16.mxu1 %v1528_v12  ;;  %2885 = vst [vmem:[#allocation81_spill] sm:$0xff] %v2346_v20  ;;  %v1536_v12 = vpack.c.bf16 %v2017_v62, %v2031_v57 }
 0x1b8   :  { %1461 = vmatmul.mubr.msk.f32.gmra.mrb[2].mxu1 %vm257_vm1, %v2328_v17 }
 0x1b9   :  { %1531 = vmatpush1.bf16.msra.mxu1 %v1530_v37  ;;  %1463 = vmatprep.mubr.msk.f32.mxu1 %vm257_vm1, %v2335_v44  ;;  %v2364_v37 = vld [vmem:[%s2729_s7 + $0x38] sm:$0xff] }
 0x1ba   :  { %1533 = vmatprep.subr.bf16.mxu1 %v1532_v45  ;;  %2887 = vst [vmem:[#allocation83_spill] sm:$0xff] %v2364_v37  ;;  %v1538_v45 = vpack.c.bf16 %v2013_v61, %v2027_v34 }
 0x1bc   :  { %1464 = vmatmul.mubr.msk.f32.gmra.mrb[4].mxu1 %vm257_vm1, %v2346_v20 }
 0x1bd   :  { %1535 = vmatpush1.bf16.msra.mxu1 %v1534_v58  ;;  %1466 = vmatprep.mubr.msk.f32.mxu1 %vm257_vm1, %v2353_v39  ;;  %v2376_v58 = vld [vmem:[#allocation5 + $0x8] sm:$0xff] }
 0x1be   :  { %1537 = vmatprep.subr.bf16.mxu1 %v1536_v12  ;;  %v2382_v12 = vpop.permute.xlu1 %394 }
 0x1c0   :  { %1467 = vmatmul.mubr.msk.f32.gmra.mrb[6].mxu1 %vm257_vm1, %v2364_v37 }
 0x1c1   :  { %1539 = vmatpush1.bf16.msra.mxu1 %v1538_v45  ;;  %467 = vmatprep.mubr.f32.mxu1 %v2888_v32 }
 0x1c2   :  { %v793_v45 = vpop.xlane.xlu1 %792 }
 0x1c3   :  { %v815_v57 = vmul.f32 0.00390625, %v793_v45 }
 0x1c4   :  { %1348 = vmatmul.mubr.msk.f32.vlgmr.msra.gmra.mrb[8].mxu1 %vm173_vm0, %v2371_v33 }
 0x1c5   :  { %473 = vmatprep.mubr.f32.mxu1 %v2888_v32 }
 0x1c6   :  { %v799_v31 = vpop.xlane.xlu1 %798 }
 0x1c8   :  { %1349 = vmatmul.mubr.msk.f32.gmra.mrb[10].mxu1 %vm173_vm0, %v2376_v58 }
 0x1c9   :  { %1492 = vmatprep.mubr.msk.f32.mxu1 %vm257_vm1, %v2058_v5 }
 0x287   :  { %v1459_v50 = vpop.f32.mrb[0].mxu1 }
 0x288   :  { %v354_v53 = vadd.f32 %v1459_v50, %v2387_v15  ;;  %v348_v36 = vpop.f32.mrb[1].mxu1 }
 0x289   :  { %v349_v5 = vadd.f32 %v348_v36, %v2392_v63  ;;  %v2411_v36 = vld [vmem:[%s2730_s8 + $0x28] sm:$0xff]  ;;  %v802_v63 = vpop.xlane.xlu1 %801 }
 0x28a   :  { %491 = vperm.xlu1 %1594, %v354_v53   ;;  %2893 = vst [vmem:[#allocation88_spill] sm:$0xff] %v2411_v36  ;;  %v2416_v53 = vld [vmem:[%s2730_s8 + $0x20] sm:$0xff]  ;;  %v818_v49 = vmul.f32 0.00390625, %v802_v63  ;;  %v2491_v63 = vld [vmem:[%s2726_s4 + $0x30] sm:$0xff] }
 0x28b   :  { %v1462_v37 = vpop.f32.mrb[2].mxu1  ;;  %486 = vperm.xlu0 %1593, %v349_v5   ;;  %2894 = vst [vmem:[#allocation89_spill] sm:$0xff] %v2416_v53 }
 0x28c   :  { %v364_v39 = vadd.f32 %v1462_v37, %v2399_v47  ;;  %v358_v50 = vpop.f32.mrb[3].mxu1 }
 0x28d   :  { %v359_v15 = vadd.f32 %v358_v50, %v2404_v60  ;;  %v2423_v50 = vld [vmem:[%s2730_s8 + $0x38] sm:$0xff]  ;;  %v2428_v60 = vld [vmem:[%s2730_s8 + $0x30] sm:$0xff] }
 0x28e   :  { %2895 = vst [vmem:[#allocation90_spill] sm:$0xff] %v2423_v50  ;;  %2896 = vst [vmem:[#allocation91_spill] sm:$0xff] %v2428_v60 }
 0x28f   :  { %v1465_v20 = vpop.f32.mrb[4].mxu1  ;;  %496 = vperm.xlu1 %1594, %v359_v15   ;;  %501 = vperm.xlu0 %1593, %v364_v39  }
 0x290   :  { %v374_v5 = vadd.f32 %v1465_v20, %v2411_v36  ;;  %v368_v37 = vpop.f32.mrb[5].mxu1  ;;  %v805_v20 = vpop.xlane.xlu1 %804 }
 0x291   :  { %v369_v47 = vadd.f32 %v368_v37, %v2416_v53  ;;  %v2432_v37 = vpop.permute.xlu0 %389 }
 0x293   :  { %v1468_v44 = vpop.f32.mrb[6].mxu1  ;;  %506 = vperm.xlu1 %1594, %v369_v47   ;;  %511 = vperm.xlu0 %1593, %v374_v5  }
 0x294   :  { %v384_v15 = vadd.f32 %v1468_v44, %v2423_v50  ;;  %v378_v39 = vpop.f32.mrb[7].mxu1  ;;  %v808_v46 = vpop.xlane.xlu1 %807 }
 0x295   :  { %v379_v36 = vadd.f32 %v378_v39, %v2428_v60  ;;  %v796_v62 = vpop.xlane.xlu0 %795 }
 0x296   :  { %v816_v39 = vmul.f32 0.00390625, %v796_v62  ;;  %v819_v62 = vmul.f32 0.00390625, %v805_v20  ;;  %v1568_v20 = vpack.c.bf16 %v2249_v0, %v2239_v23 }
 0x297   :  { %516 = vperm.xlu1 %1594, %v379_v36   ;;  %521 = vperm.xlu0 %1593, %v384_v15   ;;  %v469_v53 = vpop.f32.mrb[8].mxu1 }
 0x298   :  { %v471_v17 = vpop.f32.mrb[9].mxu1  ;;  %v470_v3 = vadd.f32 %v469_v53, %v2432_v37  ;;  %v811_v40 = vpop.xlane.xlu1 %810  ;;  %v817_v53 = vmul.f32 0.00390625, %v799_v31  ;;  %v1544_v59 = vpack.c.bf16 %v816_v39, %v815_v57  ;;  %v2475_v31 = vld [vmem:[%s2726_s4 + $0x20] sm:$0xff]  ;;  %v1576_v39 = vpack.c.bf16 %v2289_v56, %v2279_v52 }
 0x299   :  { %v472_v61 = vadd.f32 %v471_v17, %v2432_v37  ;;  %v2441_v17 = vld [vmem:[%s2726_s4] sm:$0xff]  ;;  %v821_v57 = vmul.f32 0.00390625, %v811_v40  ;;  %v2465_v40 = vld [vmem:[%s2726_s4 + $0x18] sm:$0xff] }
 0x29a   :  { %v480_v60 = vmax.f32 %v470_v3, 0.0  ;;  %v820_v3 = vmul.f32 0.00390625, %v808_v46  ;;  %v2457_v46 = vld [vmem:[%s2726_s4 + $0x10] sm:$0xff] }
 0x29b   :  { %v475_v47 = vpop.f32.mrb[10].mxu1  ;;  %v481_v36 = vmax.f32 %v472_v61, 0.0 }
 0x29c   :  { %v476_v5 = vadd.f32 %v475_v47, %v2382_v12  ;;  %v477_v44 = vpop.f32.mrb[11].mxu1  ;;  %v1548_v47 = vpack.c.bf16 %v818_v49, %v817_v53  ;;  %v814_v45 = vpop.xlane.xlu1 %813 }
 0x29d   :  { %v478_v50 = vadd.f32 %v477_v44, %v2382_v12  ;;  %v822_v61 = vmul.f32 0.00390625, %v814_v45  ;;  %v1572_v44 = vpack.c.bf16 %v2269_v42, %v2259_v1 }
 0x29e   :  { %v482_v34 = vmax.f32 %v476_v5, 0.0  ;;  %v1570_v5 = vpack.c.bf16 %v2245_v43, %v2235_v16 }
 0x29f   :  { %v483_v15 = vmax.f32 %v478_v50, 0.0  ;;  %v1556_v49 = vpack.c.bf16 %v822_v61, %v821_v57  ;;  %v1566_v50 = vpack.c.bf16 %v2215_v2, %v2225_v29 }
 0x2a0   :  { %v1542_v41 = vpack.c.bf16 %v482_v34, %v480_v60  ;;  %v1564_v34 = vpack.c.bf16 %v2219_v18, %v2229_v28  ;;  %v2483_v60 = vld [vmem:[%s2726_s4 + $0x28] sm:$0xff] }
 0x2a1   :  { %v1540_v19 = vpack.c.bf16 %v483_v15, %v481_v36 }
 0x2a3   :  { %1541 = vmatprep.subr.bf16.mxu0 %v1540_v19  ;;  %v2449_v19 = vld [vmem:[%s2726_s4 + $0x8] sm:$0xff] }
 0x2a4   :  { %1543 = vmatpush1.bf16.msra.mxu0 %v1542_v41  ;;  %v1552_v41 = vpack.c.bf16 %v820_v3, %v819_v62 }
 0x2a5   :  { %1545 = vmatprep.subr.bf16.mxu0 %v1544_v59 }
 0x2a7   :  { %1350 = vmatmul.mubr.msk.f32.vlgmr.msra.gmra.mrb[2].mxu0 %vm257_vm1, %v2441_v17 }
 0x2a8   :  { %618 = vmatprep.mubr.f32.mxu0 %v2888_v32  ;;  %1547 = vmatpush3.bf16.msra.mxu0 %v1544_v59  ;;  %v2499_v59 = vld [vmem:[%s2726_s4 + $0x38] sm:$0xff]  ;;  %s1739_s4 = smov [#allocation7]  }
 0x2a9   :  { %1549 = vmatprep.subr.bf16.mxu0 %v1548_v47  ;;  %s1325_s2 = sshll.u32 %s1739_s4, 4  ;;  %s1326_s2 = int_to_ptr.vmem [resolvable:$true] %s1325_s2 }
 0x2aa   :  { %s1703_s21 = scalar_lea.vmem %s1326_s2, 4096  ;;  %p1708_p3 = scmp.lt.s32.totalorder %s1326_s2, %s1326_s2 }
 0x2ab   :  { %1351 = vmatmul.mubr.msk.f32.gmra.mrb[4].mxu0 %vm257_vm1, %v2449_v19  ;;  %p1704_p2 = scmp.ne.s32.totalorder %s1326_s2, %s1703_s21  ;;  %p1709_p4 = scmp.lt.s32.totalorder %s1703_s21, %s1703_s21 }
 0x2ac   :  { %624 = vmatprep.mubr.f32.mxu0 %v2888_v32  ;;  %1551 = vmatpush3.bf16.msra.mxu0 %v1548_v47 }
 0x2ad   :  { %1553 = vmatprep.subr.bf16.mxu0 %v1552_v41  ;;  %p1710_p5 = por %p1709_p4, %p1708_p3 }
 0x2af   :  { %1352 = vmatmul.mubr.msk.f32.gmra.mrb[6].mxu0 %vm257_vm1, %v2457_v46  ;;  %p1711_p6 = pnand %p1710_p5, %p1704_p2 }
 0x2b0   :  { %630 = vmatprep.mubr.f32.mxu0 %v2888_v32  ;;  %1555 = vmatpush3.bf16.msra.mxu0 %v1552_v41 }
 0x2b1   :  { %1557 = vmatprep.subr.bf16.mxu0 %v1556_v49 }
 0x2b3   :  { %1353 = vmatmul.mubr.msk.f32.gmra.mrb[8].mxu0 %vm257_vm1, %v2465_v40 }
 0x2b4   :  { %636 = vmatprep.mubr.f32.mxu0 %v2888_v32  ;;  %1559 = vmatpush3.bf16.msra.mxu0 %v1556_v49 }
 0x2b5   :  { %1565 = vmatprep.subr.bf16.mxu0 %v1564_v34 }
 0x2b7   :  { %1354 = vmatmul.mubr.msk.f32.gmra.mrb[10].mxu0 %vm257_vm1, %v2475_v31 }
 0x2b8   :  { %642 = vmatprep.mubr.f32.mxu0 %v2888_v32 }
 0x2bb   :  { %1355 = vmatmul.mubr.msk.f32.gmra.mrb[12].mxu0 %vm257_vm1, %v2483_v60 }
 0x2bc   :  { %648 = vmatprep.mubr.f32.mxu0 %v2888_v32 }
 0x2bf   :  { %1356 = vmatmul.mubr.msk.f32.gmra.mrb[14].mxu0 %vm257_vm1, %v2491_v63 }
 0x2c0   :  { %654 = vmatprep.mubr.f32.mxu0 %v2888_v32 }
 0x2c3   :  { %1357 = vmatmul.mubr.msk.f32.gmra.mrb[16].mxu0 %vm257_vm1, %v2499_v59 }
 0x2c4   :  { %1485 = vmatprep.mubr.msk.f32.mxu0 %vm173_vm0, %v2044_v55  ;;  %v1574_v55 = vpack.c.bf16 %v2265_v51, %v2255_v27 }
 0x2c7   :  { %1486 = vmatmul.mubr.msk.f32.vlgmr.msra.gmra.mrb[18].mxu0 %vm173_vm0, %v2051_v9  ;;  %v1578_v9 = vpack.c.bf16 %v2285_v54, %v2275_v38 }
 0x2c8   :  { %1567 = vmatpush1.bf16.msra.mxu0 %v1566_v50  ;;  %1069 = vmatprep.mubr.f32.mxu0 %v2888_v32 }
 0x2c9   :  { %1569 = vmatprep.subr.bf16.mxu0 %v1568_v20 }
 0x2cc   :  { %1571 = vmatpush1.bf16.msra.mxu0 %v1570_v5 }
 0x2cd   :  { %1573 = vmatprep.subr.bf16.mxu0 %v1572_v44 }
 0x2d0   :  { %1575 = vmatpush1.bf16.msra.mxu0 %v1574_v55 }
 0x2d1   :  { %1577 = vmatprep.subr.bf16.mxu0 %v1576_v39 }
 0x2d4   :  { %1579 = vmatpush1.bf16.msra.mxu0 %v1578_v9 }
 0x2d7   :  { %1384 = vmatmul.mubr.msk.f32.vlgmr.msra.gmra.mrb[20].mxu0 %vm173_vm0, %v2371_v33 }
 0x2d8   :  { %1075 = vmatprep.mubr.f32.mxu0 %v2888_v32 }
 0x2db   :  { %1385 = vmatmul.mubr.msk.f32.gmra.mrb[22].mxu0 %vm173_vm0, %v2376_v58 }
 0x309   :  { %v492_v62 = vpop.permute.xlu1 %491 }
 0x30a   :  { %v487_v36 = vpop.permute.xlu0 %486 }
 0x30e   :  { %v497_v49 = vpop.permute.xlu1 %496  ;;  %v502_v58 = vpop.permute.xlu0 %501 }
 0x37a   :  { %v614_v15 = vpop.f32.mrb[2].mxu0 }
 0x37b   :  { %v615_v53 = vadd.f32 %v614_v15, %v487_v36  ;;  %v616_v47 = vpop.f32.mrb[3].mxu0 }
 0x37c   :  { %v617_v3 = vadd.f32 %v616_v47, %v487_v36  ;;  %v2897_v36 = vsub.f32 %v1840_v6, %v1853_v10  ;;  %v2898_v47 = vsub.f32 %v1845_v7, %v1855_v11  ;;  %v2899_v6 = vsub.f32 %v1898_v24, %v1905_v26  ;;  %v2900_v7 = vld [vmem:[#allocation19_spill] sm:$0xff]  ;;  %v2903_v26 = vld [vmem:[#allocation13_spill] sm:$0xff] }
 0x37d   :  { %1595 = vtanh.f32 %v615_v53  ;;  %v2901_v11 = vsub.f32 %v1903_v25, %v2900_v7  ;;  %v2902_v24 = vld [vmem:[#allocation11_spill] sm:$0xff]  ;;  %v2905_v25 = vld [vmem:[#allocation12_spill] sm:$0xff] }
 0x37e   :  { %1597 = vtanh.f32 %v617_v3  ;;  %v620_v45 = vpop.f32.mrb[4].mxu0  ;;  %v507_v3 = vpop.permute.xlu1 %506 }
 0x37f   :  { %v621_v41 = vadd.f32 %v620_v45, %v492_v62  ;;  %v622_v57 = vpop.f32.mrb[5].mxu0 }
 0x380   :  { %v623_v61 = vadd.f32 %v622_v57, %v492_v62 }
 0x381   :  { %1599 = vtanh.f32 %v621_v41 }
 0x382   :  { %1601 = vtanh.f32 %v623_v61  ;;  %v626_v33 = vpop.f32.mrb[6].mxu0 }
 0x383   :  { %v627_v34 = vadd.f32 %v626_v33, %v497_v49  ;;  %v628_v50 = vpop.f32.mrb[7].mxu0 }
 0x384   :  { %v629_v20 = vadd.f32 %v628_v50, %v497_v49 }
 0x385   :  { %1603 = vtanh.f32 %v627_v34 }
 0x386   :  { %1605 = vtanh.f32 %v629_v20  ;;  %v632_v5 = vpop.f32.mrb[8].mxu0 }
 0x387   :  { %v1596_v44 = vpop.eup %1595  ;;  %v633_v55 = vadd.f32 %v632_v5, %v502_v58  ;;  %v634_v39 = vpop.f32.mrb[9].mxu0 }
 0x388   :  { %v1598_v9 = vpop.eup %1597  ;;  %v693_v15 = vmul.f32 %v1596_v44, %v2897_v36  ;;  %v635_v53 = vadd.f32 %v634_v39, %v502_v58  ;;  %v2904_v36 = vsub.f32 %v2902_v24, %v2903_v26  ;;  %v2914_v24 = vld [vmem:[#allocation24_spill] sm:$0xff] }
 0x389   :  { %v694_v62 = vmul.f32 %v1598_v9, %v2898_v47  ;;  %1607 = vtanh.f32 %v633_v55  ;;  %v2906_v47 = vld [vmem:[#allocation14_spill] sm:$0xff]  ;;  %v2915_v26 = vld [vmem:[#allocation28_spill] sm:$0xff] }
 0x38a   :  { %v709_v45 = vadd.f32 %v693_v15, %v1864_v13  ;;  %1609 = vtanh.f32 %v635_v53  ;;  %v638_v41 = vpop.f32.mrb[10].mxu0  ;;  %v512_v13 = vpop.permute.xlu0 %511 }
 0x38b   :  { %v1600_v57 = vpop.eup %1599  ;;  %v710_v61 = vadd.f32 %v694_v62, %v1868_v14  ;;  %v639_v49 = vadd.f32 %v638_v41, %v507_v3  ;;  %v640_v33 = vpop.f32.mrb[11].mxu0  ;;  %v2907_v62 = vsub.f32 %v2905_v25, %v2906_v47  ;;  %v2917_v25 = vld [vmem:[#allocation27_spill] sm:$0xff]  ;;  %v2918_v47 = vld [vmem:[#allocation29_spill] sm:$0xff] }
 0x38c   :  { %v1602_v34 = vpop.eup %1601  ;;  %725 = vst [vmem:[#allocation7] sm:$0xff] %v709_v45  ;;  %v695_v10 = vmul.f32 %v1600_v57, %v2899_v6  ;;  %v641_v50 = vadd.f32 %v640_v33, %v507_v3  ;;  %v2909_v6 = vld [vmem:[#allocation17_spill] sm:$0xff] }
 0x38d   :  { %726 = vst [vmem:[#allocation7 + $0x8] sm:$0xff] %v710_v61  ;;  %v696_v20 = vmul.f32 %v1602_v34, %v2901_v11  ;;  %1611 = vtanh.f32 %v639_v49  ;;  %v2908_v34 = vld [vmem:[#allocation15_spill] sm:$0xff]  ;;  %v2911_v11 = vld [vmem:[#allocation16_spill] sm:$0xff] }
 0x38e   :  { %v711_v58 = vadd.f32 %v695_v10, %v1915_v30  ;;  %1613 = vtanh.f32 %v641_v50  ;;  %v644_v14 = vpop.f32.mrb[12].mxu0  ;;  %v517_v30 = vpop.permute.xlu1 %516  ;;  %v2910_v10 = vsub.f32 %v2908_v34, %v2909_v6  ;;  %v2923_v34 = vld [vmem:[#allocation22_spill] sm:$0xff] }
 0x38f   :  { %v1604_v5 = vpop.eup %1603  ;;  %v712_v44 = vadd.f32 %v696_v20, %v1933_v35  ;;  %v645_v55 = vadd.f32 %v644_v14, %v512_v13  ;;  %v646_v39 = vpop.f32.mrb[13].mxu0  ;;  %v2912_v20 = vld [vmem:[#allocation18_spill] sm:$0xff] }
 0x390   :  { %v1606_v9 = vpop.eup %1605  ;;  %727 = vst [vmem:[#allocation7 + $0x10] sm:$0xff] %v711_v58  ;;  %v697_v15 = vmul.f32 %v1604_v5, %v2904_v36  ;;  %v647_v53 = vadd.f32 %v646_v39, %v512_v13  ;;  %v2913_v13 = vsub.f32 %v2911_v11, %v2912_v20  ;;  %v2916_v36 = vsub.f32 %v2914_v24, %v2915_v26  ;;  %v2926_v11 = vld [vmem:[#allocation21_spill] sm:$0xff]  ;;  %v2927_v20 = vld [vmem:[#allocation23_spill] sm:$0xff] }
 0x391   :  { %728 = vst [vmem:[#allocation7 + $0x18] sm:$0xff] %v712_v44  ;;  %v698_v3 = vmul.f32 %v1606_v9, %v2907_v62  ;;  %1615 = vtanh.f32 %v645_v55  ;;  %v2919_v62 = vsub.f32 %v2917_v25, %v2918_v47  ;;  %v2932_v24 = vld [vmem:[#allocation39_spill] sm:$0xff]  ;;  %v2935_v25 = vld [vmem:[#allocation40_spill] sm:$0xff] }
 0x392   :  { %v713_v45 = vadd.f32 %v697_v15, %v1833_v4  ;;  %1617 = vtanh.f32 %v647_v53  ;;  %v650_v35 = vpop.f32.mrb[14].mxu0  ;;  %v522_v4 = vpop.permute.xlu0 %521 }
 0x393   :  { %v1608_v41 = vpop.eup %1607  ;;  %v714_v57 = vadd.f32 %v698_v3, %v1849_v8  ;;  %v651_v61 = vadd.f32 %v650_v35, %v517_v30  ;;  %v652_v49 = vpop.f32.mrb[15].mxu0 }
 0x394   :  { %v1610_v33 = vpop.eup %1609  ;;  %729 = vst [vmem:[#allocation7 + $0x20] sm:$0xff] %v713_v45  ;;  %v699_v50 = vmul.f32 %v1608_v41, %v2910_v10  ;;  %v653_v7 = vadd.f32 %v652_v49, %v517_v30  ;;  %v2920_v45 = vld [vmem:[#allocation30_spill] sm:$0xff]  ;;  %v2921_v41 = vld [vmem:[#allocation75_spill] sm:$0xff] }
 0x395   :  { %730 = vst [vmem:[#allocation7 + $0x28] sm:$0xff] %v714_v57  ;;  %v700_v58 = vmul.f32 %v1610_v33, %v2913_v13  ;;  %1619 = vtanh.f32 %v651_v61  ;;  %v2922_v33 = vld [vmem:[#allocation20_spill] sm:$0xff] }
 0x396   :  { %v715_v14 = vadd.f32 %v699_v50, %v1887_v21  ;;  %1621 = vtanh.f32 %v653_v7  ;;  %v656_v8 = vpop.f32.mrb[16].mxu0  ;;  %v2924_v6 = vsub.f32 %v2922_v33, %v2923_v34  ;;  %v2925_v50 = vld [vmem:[#allocation76_spill] sm:$0xff]  ;;  %v2943_v34 = vld [vmem:[#allocation34_spill] sm:$0xff] }
 0x397   :  { %v1612_v5 = vpop.eup %1611  ;;  %v716_v44 = vadd.f32 %v700_v58, %v1891_v22  ;;  %v657_v55 = vadd.f32 %v656_v8, %v522_v4  ;;  %v658_v39 = vpop.f32.mrb[17].mxu0  ;;  %v2942_v33 = vld [vmem:[#allocation32_spill] sm:$0xff] }
 0x398   :  { %v1614_v9 = vpop.eup %1613  ;;  %731 = vst [vmem:[#allocation7 + $0x30] sm:$0xff] %v715_v14  ;;  %v701_v15 = vmul.f32 %v1612_v5, %v2916_v36  ;;  %v659_v53 = vadd.f32 %v658_v39, %v522_v4  ;;  %v2929_v4 = vld [vmem:[#allocation25_spill] sm:$0xff] }
 0x399   :  { %732 = vst [vmem:[#allocation7 + $0x38] sm:$0xff] %v716_v44  ;;  %v702_v3 = vmul.f32 %v1614_v9, %v2919_v62  ;;  %1623 = vtanh.f32 %v657_v55  ;;  %v2930_v44 = vld [vmem:[#allocation26_spill] sm:$0xff]  ;;  %v2931_v9 = vld [vmem:[#allocation35_spill] sm:$0xff] }
 0x39a   :  { %v717_v21 = vadd.f32 %v701_v15, %v1971_v48  ;;  %1625 = vtanh.f32 %v659_v53  ;;  %v1487_v30 = vpop.f32.mrb[18].mxu0  ;;  %v2928_v48 = vsub.f32 %v2926_v11, %v2927_v20  ;;  %v2933_v26 = vsub.f32 %v2931_v9, %v2932_v24  ;;  %v2934_v53 = vld [vmem:[#allocation36_spill] sm:$0xff]  ;;  %v2946_v11 = vld [vmem:[#allocation77_spill] sm:$0xff]  ;;  %v2947_v20 = vld [vmem:[#allocation38_spill] sm:$0xff] }
 0x39b   :  { %v1616_v22 = vpop.eup %1615  ;;  %v718_v35 = vadd.f32 %v702_v3, %v2920_v45  ;;  %v895_v57 = vadd.f32 %v1487_v30, %v2921_v41  ;;  %v889_v61 = vpop.f32.mrb[19].mxu0  ;;  %v2936_v47 = vsub.f32 %v2934_v53, %v2935_v25  ;;  %v2937_v3 = vld [vmem:[#allocation41_spill] sm:$0xff]  ;;  %v2939_v41 = vld [vmem:[#allocation31_spill] sm:$0xff] }
 0x39c   :  { %v1618_v49 = vpop.eup %1617  ;;  %733 = vst [vmem:[#allocation7 + $0x40] sm:$0xff] %v717_v21  ;;  %v703_v10 = vmul.f32 %v1616_v22, %v2924_v6  ;;  %v890_v7 = vadd.f32 %v889_v61, %v2925_v50  ;;  %v2938_v22 = vld [vmem:[#allocation42_spill] sm:$0xff]  ;;  %v2944_v6 = vsub.f32 %v2942_v33, %v2943_v34  ;;  %v2945_v50 = vld [vmem:[#allocation37_spill] sm:$0xff] }
 0x39d   :  { %734 = vst [vmem:[#allocation7 + $0x48] sm:$0xff] %v718_v35  ;;  %v704_v13 = vmul.f32 %v1618_v49, %v2928_v48  ;;  %v899_v58 = vmax.f32 %v895_v57, 0.0  ;;  %v2940_v57 = vld [vmem:[#allocation33_spill] sm:$0xff]  ;;  %v2960_v33 = vld [vmem:[#allocation90_spill] sm:$0xff] }
 0x39e   :  { %v719_v14 = vadd.f32 %v703_v10, %v2929_v4  ;;  %v898_v8 = vmax.f32 %v890_v7, 0.0  ;;  %v2941_v61 = vsub.f32 %v2939_v41, %v2940_v57  ;;  %v2949_v4 = vld [vmem:[#allocation79_spill] sm:$0xff]  ;;  %v2959_v57 = vld [vmem:[#allocation89_spill] sm:$0xff] }
 0x39f   :  { %v1620_v5 = vpop.eup %1619  ;;  %v720_v55 = vadd.f32 %v704_v13, %v2930_v44  ;;  %v2948_v13 = vld [vmem:[#allocation78_spill] sm:$0xff] }
 0x3a0   :  { %v1622_v39 = vpop.eup %1621  ;;  %735 = vst [vmem:[#allocation7 + $0x50] sm:$0xff] %v719_v14  ;;  %v705_v36 = vmul.f32 %v1620_v5, %v2933_v26  ;;  %v1560_v15 = vpack.c.bf16 %v899_v58, %v898_v8  ;;  %v2950_v8 = vld [vmem:[#allocation80_spill] sm:$0xff]  ;;  %v2952_v26 = vld [vmem:[#allocation82_spill] sm:$0xff] }
 0x3a1   :  { %736 = vst [vmem:[#allocation7 + $0x58] sm:$0xff] %v720_v55  ;;  %v706_v62 = vmul.f32 %v1622_v39, %v2936_v47  ;;  %v2951_v39 = vld [vmem:[#allocation81_spill] sm:$0xff] }
 0x3a2   :  { %v721_v21 = vadd.f32 %v705_v36, %v2937_v3  ;;  %1561 = vmatprep.subr.bf16.mxu1 %v1560_v15 }
 0x3a3   :  { %v1624_v30 = vpop.eup %1623  ;;  %v722_v45 = vadd.f32 %v706_v62, %v2938_v22  ;;  %1563 = vmatpush3.bf16.msra.mxu1 %v1560_v15  ;;  %v2953_v62 = vld [vmem:[#allocation83_spill] sm:$0xff] }
 0x3a4   :  { %v1626_v35 = vpop.eup %1625  ;;  %737 = vst [vmem:[#allocation7 + $0x60] sm:$0xff] %v721_v21  ;;  %v707_v49 = vmul.f32 %v1624_v30, %v2941_v61 }
 0x3a5   :  { %738 = vst [vmem:[#allocation7 + $0x68] sm:$0xff] %v722_v45  ;;  %v708_v10 = vmul.f32 %v1626_v35, %v2944_v6  ;;  %v2957_v45 = vld [vmem:[#allocation87_spill] sm:$0xff] }
 0x3a6   :  { %v723_v7 = vadd.f32 %v707_v49, %v2945_v50  ;;  %1493 = vmatmul.mubr.msk.f32.vlgmr.msra.gmra.mrb[12].mxu1 %vm257_vm1, %v2946_v11 }
 0x3a7   :  { %v724_v48 = vadd.f32 %v708_v10, %v2947_v20  ;;  %1495 = vmatprep.mubr.msk.f32.mxu1 %vm257_vm1, %v2948_v13  ;;  %v2961_v10 = vld [vmem:[#allocation91_spill] sm:$0xff] }
 0x3a8   :  { %739 = vst [vmem:[#allocation7 + $0x70] sm:$0xff] %v723_v7 }
 0x3a9   :  { %740 = vst [vmem:[#allocation7 + $0x78] sm:$0xff] %v724_v48 }
 0x3aa   :  { %v1071_v58 = vpop.f32.mrb[20].mxu0  ;;  %1496 = vmatmul.mubr.msk.f32.gmra.mrb[14].mxu1 %vm257_vm1, %v2949_v4 }
 0x3ab   :  { %v1073_v14 = vpop.f32.mrb[21].mxu0  ;;  %1498 = vmatprep.mubr.msk.f32.mxu1 %vm257_vm1, %v2950_v8  ;;  %v1072_v5 = vadd.f32 %v1071_v58, %v2432_v37 }
 0x3ac   :  { %v1074_v44 = vadd.f32 %v1073_v14, %v2432_v37 }
 0x3ad   :  { %v1082_v15 = vmax.f32 %v1072_v5, 0.0 }
 0x3ae   :  { %v1077_v55 = vpop.f32.mrb[22].mxu0  ;;  %1499 = vmatmul.mubr.msk.f32.gmra.mrb[16].mxu1 %vm257_vm1, %v2951_v39  ;;  %v1083_v25 = vmax.f32 %v1074_v44, 0.0 }
 0x3af   :  { %v1078_v9 = vadd.f32 %v1077_v55, %v2382_v12  ;;  %v1079_v24 = vpop.f32.mrb[23].mxu0  ;;  %1501 = vmatprep.mubr.msk.f32.mxu1 %vm257_vm1, %v2952_v26 }
 0x3b0   :  { %v1080_v36 = vadd.f32 %v1079_v24, %v2382_v12 }
 0x3b1   :  { %v1084_v53 = vmax.f32 %v1078_v9, 0.0 }
 0x3b2   :  { %v1085_v47 = vmax.f32 %v1080_v36, 0.0  ;;  %1502 = vmatmul.mubr.msk.f32.gmra.mrb[18].mxu1 %vm257_vm1, %v2953_v62 }
 0x3b3   :  { %v1582_v37 = vpack.c.bf16 %v1084_v53, %v1082_v15  ;;  %1190 = vmatprep.mubr.f32.mxu1 %v2888_v32 }
 0x3b4   :  { %v1580_v3 = vpack.c.bf16 %v1085_v47, %v1083_v25 }
 0x3b6   :  { %1581 = vmatprep.subr.bf16.mxu1 %v1580_v3 }
 0x3b7   :  { %1583 = vmatpush1.bf16.msra.mxu1 %v1582_v37 }
 0x3ba   :  { %1386 = vmatmul.mubr.msk.f32.vlgmr.msra.gmra.mrb[20].mxu1 %vm257_vm1, %v2441_v17  ;;  %v2954_v17 = vld [vmem:[#allocation84_spill] sm:$0xff] }
 0x3bb   :  { %1196 = vmatprep.mubr.f32.mxu1 %v2888_v32 }
 0x3be   :  { %1387 = vmatmul.mubr.msk.f32.gmra.mrb[22].mxu1 %vm257_vm1, %v2449_v19 }
 0x3bf   :  { %1202 = vmatprep.mubr.f32.mxu1 %v2888_v32 }
 0x3c2   :  { %1388 = vmatmul.mubr.msk.f32.gmra.mrb[24].mxu1 %vm257_vm1, %v2457_v46 }
 0x3c3   :  { %1208 = vmatprep.mubr.f32.mxu1 %v2888_v32 }
 0x3c6   :  { %1389 = vmatmul.mubr.msk.f32.gmra.mrb[26].mxu1 %vm257_vm1, %v2465_v40  ;;  %v2955_v40 = vld [vmem:[#allocation85_spill] sm:$0xff] }
 0x3c7   :  { %1214 = vmatprep.mubr.f32.mxu1 %v2888_v32 }
 0x3ca   :  { %1390 = vmatmul.mubr.msk.f32.gmra.mrb[28].mxu1 %vm257_vm1, %v2475_v31 }
 0x3cb   :  { %1220 = vmatprep.mubr.f32.mxu1 %v2888_v32 }
 0x3ce   :  { %1391 = vmatmul.mubr.msk.f32.gmra.mrb[30].mxu1 %vm257_vm1, %v2483_v60  ;;  %v2956_v60 = vld [vmem:[#allocation86_spill] sm:$0xff] }
 0x3cf   :  { %1226 = vmatprep.mubr.f32.mxu1 %v2888_v32 }
 0x3d2   :  { %1392 = vmatmul.mubr.msk.f32.gmra.mrb[32].mxu1 %vm257_vm1, %v2491_v63 }
 0x3d3   :  { %1232 = vmatprep.mubr.f32.mxu1 %v2888_v32  ;;  %v2958_v32 = vld [vmem:[#allocation88_spill] sm:$0xff] }
 0x3d6   :  { %1393 = vmatmul.mubr.msk.f32.gmra.mrb[34].mxu1 %vm257_vm1, %v2499_v59 }
 0x479   :  { %v1494_v12 = vpop.f32.mrb[12].mxu1 }
 0x47a   :  { %v972_v19 = vadd.f32 %v1494_v12, %v2954_v17  ;;  %v966_v46 = vpop.f32.mrb[13].mxu1 }
 0x47b   :  { %v967_v31 = vadd.f32 %v966_v46, %v2955_v40 }
 0x47c   :  { %1093 = vperm.xlu0 %1593, %v972_v19  }
 0x47d   :  { %v1497_v21 = vpop.f32.mrb[14].mxu1  ;;  %1088 = vperm.xlu1 %1594, %v967_v31  }
 0x47e   :  { %v982_v30 = vadd.f32 %v1497_v21, %v2956_v60  ;;  %v976_v22 = vpop.f32.mrb[15].mxu1 }
 0x47f   :  { %v977_v35 = vadd.f32 %v976_v22, %v2957_v45 }
 0x480   :  { %1103 = vperm.xlu0 %1593, %v982_v30  }
 0x481   :  { %v1500_v63 = vpop.f32.mrb[16].mxu1  ;;  %1098 = vperm.xlu1 %1594, %v977_v35  }
 0x482   :  { %v992_v41 = vadd.f32 %v1500_v63, %v2958_v32  ;;  %v986_v59 = vpop.f32.mrb[17].mxu1 }
 0x483   :  { %v987_v61 = vadd.f32 %v986_v59, %v2959_v57  ;;  %v2962_v57 = vld [vmem:[#allocation51_spill] sm:$0xff] }
 0x484   :  { %1113 = vperm.xlu0 %1593, %v992_v41  }
 0x485   :  { %v1503_v49 = vpop.f32.mrb[18].mxu1  ;;  %1108 = vperm.xlu1 %1594, %v987_v61   ;;  %v2963_v61 = vld [vmem:[#allocation53_spill] sm:$0xff] }
 0x486   :  { %v1002_v34 = vadd.f32 %v1503_v49, %v2960_v33  ;;  %v996_v6 = vpop.f32.mrb[19].mxu1  ;;  %v2964_v49 = vsub.f32 %v2962_v57, %v2963_v61 }
 0x487   :  { %v997_v50 = vadd.f32 %v996_v6, %v2961_v10 }
 0x488   :  { %1123 = vperm.xlu0 %1593, %v1002_v34  }
 0x489   :  { %1118 = vperm.xlu1 %1594, %v997_v50   ;;  %v2965_v50 = vld [vmem:[#allocation52_spill] sm:$0xff] }
 0x48d   :  { %v1192_v7 = vpop.f32.mrb[20].mxu1 }
 0x48e   :  { %v1194_v11 = vpop.f32.mrb[21].mxu1 }
 0x491   :  { %v1198_v20 = vpop.f32.mrb[22].mxu1 }
 0x492   :  { %v1200_v48 = vpop.f32.mrb[23].mxu1 }
 0x495   :  { %v1204_v13 = vpop.f32.mrb[24].mxu1 }
 0x496   :  { %v1206_v58 = vpop.f32.mrb[25].mxu1 }
 0x499   :  { %v1210_v4 = vpop.f32.mrb[26].mxu1 }
 0x49a   :  { %v1212_v14 = vpop.f32.mrb[27].mxu1 }
 0x49d   :  { %v1216_v8 = vpop.f32.mrb[28].mxu1 }
 0x49e   :  { %v1218_v5 = vpop.f32.mrb[29].mxu1 }
 0x4a1   :  { %v1222_v44 = vpop.f32.mrb[30].mxu1 }
 0x4a2   :  { %v1224_v55 = vpop.f32.mrb[31].mxu1 }
 0x4a5   :  { %v1228_v39 = vpop.f32.mrb[32].mxu1 }
 0x4a6   :  { %v1230_v9 = vpop.f32.mrb[33].mxu1 }
 0x4a9   :  { %v1234_v24 = vpop.f32.mrb[34].mxu1 }
 0x4aa   :  { %v1236_v26 = vpop.f32.mrb[35].mxu1 }
 0x4fb   :  { %v1094_v36 = vpop.permute.xlu0 %1093 }
 0x4fc   :  { %v1199_v15 = vadd.f32 %v1198_v20, %v1094_v36  ;;  %v1201_v53 = vadd.f32 %v1200_v48, %v1094_v36  ;;  %v1089_v25 = vpop.permute.xlu1 %1088 }
 0x4fd   :  { %v1193_v47 = vadd.f32 %v1192_v7, %v1089_v25  ;;  %v1195_v62 = vadd.f32 %v1194_v11, %v1089_v25  ;;  %v2966_v7 = vld [vmem:[#allocation54_spill] sm:$0xff] }
 0x4fe   :  { %1627 = vtanh.f32 %v1199_v15  ;;  %v2967_v11 = vsub.f32 %v2965_v50, %v2966_v7  ;;  %v2974_v15 = vld [vmem:[#allocation55_spill] sm:$0xff]  ;;  %v2993_v7 = vld [vmem:[#allocation60_spill] sm:$0xff] }
 0x4ff   :  { %1629 = vtanh.f32 %v1201_v53  ;;  %v1104_v37 = vpop.permute.xlu0 %1103  ;;  %v2975_v53 = vld [vmem:[#allocation57_spill] sm:$0xff]  ;;  %v2992_v50 = vld [vmem:[#allocation59_spill] sm:$0xff] }
 0x500   :  { %1631 = vtanh.f32 %v1193_v47  ;;  %v1211_v3 = vadd.f32 %v1210_v4, %v1104_v37  ;;  %v1213_v12 = vadd.f32 %v1212_v14, %v1104_v37  ;;  %v1099_v17 = vpop.permute.xlu1 %1098  ;;  %v2969_v4 = vld [vmem:[#allocation45_spill] sm:$0xff]  ;;  %v2977_v37 = vld [vmem:[#allocation56_spill] sm:$0xff] }
 0x501   :  { %1633 = vtanh.f32 %v1195_v62  ;;  %v1205_v19 = vadd.f32 %v1204_v13, %v1099_v17  ;;  %v1207_v46 = vadd.f32 %v1206_v58, %v1099_v17  ;;  %v2968_v58 = vld [vmem:[#allocation43_spill] sm:$0xff] }
 0x502   :  { %1635 = vtanh.f32 %v1211_v3  ;;  %v2970_v14 = vsub.f32 %v2968_v58, %v2969_v4  ;;  %v2996_v58 = vld [vmem:[#allocation62_spill] sm:$0xff] }
 0x503   :  { %1637 = vtanh.f32 %v1213_v12  ;;  %v1114_v40 = vpop.permute.xlu0 %1113 }
 0x504   :  { %1639 = vtanh.f32 %v1205_v19  ;;  %v1223_v31 = vadd.f32 %v1222_v44, %v1114_v40  ;;  %v1225_v21 = vadd.f32 %v1224_v55, %v1114_v40  ;;  %v1109_v60 = vpop.permute.xlu1 %1108  ;;  %v2971_v55 = vld [vmem:[#allocation44_spill] sm:$0xff] }
 0x505   :  { %1641 = vtanh.f32 %v1207_v46  ;;  %v1217_v30 = vadd.f32 %v1216_v8, %v1109_v60  ;;  %v1219_v22 = vadd.f32 %v1218_v5, %v1109_v60  ;;  %v2980_v46 = vld [vmem:[#allocation47_spill] sm:$0xff]  ;;  %v2981_v40 = vld [vmem:[#allocation48_spill] sm:$0xff] }
 0x506   :  { %1643 = vtanh.f32 %v1223_v31 }
 0x507   :  { %1645 = vtanh.f32 %v1225_v21  ;;  %v1124_v45 = vpop.permute.xlu0 %1123 }
 0x508   :  { %v1628_v35 = vpop.eup %1627  ;;  %1647 = vtanh.f32 %v1217_v30  ;;  %v1235_v63 = vadd.f32 %v1234_v24, %v1124_v45  ;;  %v1237_v32 = vadd.f32 %v1236_v26, %v1124_v45  ;;  %v1119_v41 = vpop.permute.xlu1 %1118  ;;  %v2983_v30 = vld [vmem:[#allocation49_spill] sm:$0xff] }
 0x509   :  { %v1630_v59 = vpop.eup %1629  ;;  %v1273_v33 = vmul.f32 %v1628_v35, %v2964_v49  ;;  %1649 = vtanh.f32 %v1219_v22  ;;  %v1229_v34 = vadd.f32 %v1228_v39, %v1119_v41  ;;  %v1231_v6 = vadd.f32 %v1230_v9, %v1119_v41  ;;  %v2972_v39 = vld [vmem:[#allocation46_spill] sm:$0xff]  ;;  %v2987_v41 = vld [vmem:[#allocation65_spill] sm:$0xff]  ;;  %v2989_v49 = vld [vmem:[#allocation64_spill] sm:$0xff] }
 0x50a   :  { %v1632_v10 = vpop.eup %1631  ;;  %v1274_v20 = vmul.f32 %v1630_v59, %v2967_v11  ;;  %1651 = vtanh.f32 %v1235_v63  ;;  %v2973_v9 = vsub.f32 %v2971_v55, %v2972_v39  ;;  %v2984_v22 = vld [vmem:[#allocation50_spill] sm:$0xff]  ;;  %v2994_v11 = vsub.f32 %v2992_v50, %v2993_v7 }
 0x50b   :  { %v1634_v48 = vpop.eup %1633  ;;  %v1289_v13 = vadd.f32 %v1273_v33, %v2215_v2  ;;  %v1271_v8 = vmul.f32 %v1632_v10, %v2970_v14  ;;  %1653 = vtanh.f32 %v1237_v32  ;;  %v2976_v2 = vsub.f32 %v2974_v15, %v2975_v53  ;;  %v2986_v32 = vld [vmem:[#allocation63_spill] sm:$0xff]  ;;  %v2990_v33 = vld [vmem:[#allocation66_spill] sm:$0xff] }
 0x50c   :  { %v1636_v5 = vpop.eup %1635  ;;  %v1290_v44 = vadd.f32 %v1274_v20, %v2219_v18  ;;  %v1272_v24 = vmul.f32 %v1634_v48, %v2973_v9  ;;  %1655 = vtanh.f32 %v1229_v34  ;;  %v2978_v18 = vld [vmem:[#allocation58_spill] sm:$0xff]  ;;  %v2985_v45 = vsub.f32 %v2983_v30, %v2984_v22 }
 0x50d   :  { %v1638_v26 = vpop.eup %1637  ;;  %1306 = vst [vmem:[#allocation7 + $0x90] sm:$0xff] %v1289_v13  ;;  %v1287_v36 = vadd.f32 %v1271_v8, %v2225_v29  ;;  %v1277_v25 = vmul.f32 %v1636_v5, %v2976_v2  ;;  %1657 = vtanh.f32 %v1231_v6  ;;  %v2979_v3 = vsub.f32 %v2977_v37, %v2978_v18  ;;  %v2995_v13 = vld [vmem:[#allocation61_spill] sm:$0xff]  ;;  %v2998_v5 = vld [vmem:[#allocation71_spill] sm:$0xff]  ;;  %v3007_v37 = vld [vmem:[#allocation68_spill] sm:$0xff] }
 0x50e   :  { %v1640_v47 = vpop.eup %1639  ;;  %1307 = vst [vmem:[#allocation7 + $0x98] sm:$0xff] %v1290_v44  ;;  %v1288_v62 = vadd.f32 %v1272_v24, %v2229_v28  ;;  %v2982_v29 = vsub.f32 %v2980_v46, %v2981_v40  ;;  %v2988_v59 = vsub.f32 %v2986_v32, %v2987_v41  ;;  %v2991_v34 = vsub.f32 %v2989_v49, %v2990_v33  ;;  %v2999_v44 = vld [vmem:[#allocation72_spill] sm:$0xff]  ;;  %v3001_v24 = vld [vmem:[#allocation73_spill] sm:$0xff]  ;;  %v3004_v2 = vld [vmem:[#allocation67_spill] sm:$0xff] }
 0x50f   :  { %v1278_v12 = vmul.f32 %v1638_v26, %v2979_v3  ;;  %v1642_v17 = vpop.eup %1641  ;;  %1304 = vst [vmem:[#allocation7 + $0x80] sm:$0xff] %v1287_v36  ;;  %v1293_v19 = vadd.f32 %v1277_v25, %v2245_v43  ;;  %v2997_v4 = vsub.f32 %v2995_v13, %v2996_v58  ;;  %v3000_v55 = vsub.f32 %v2998_v5, %v2999_v44  ;;  %v3002_v26 = vld [vmem:[#allocation74_spill] sm:$0xff]  ;;  %v3005_v25 = vld [vmem:[#allocation69_spill] sm:$0xff] }
 0x510   :  { %v1275_v31 = vmul.f32 %v1640_v47, %v2982_v29  ;;  %v1644_v21 = vpop.eup %1643  ;;  %1305 = vst [vmem:[#allocation7 + $0x88] sm:$0xff] %v1288_v62  ;;  %v1276_v28 = vmul.f32 %v1642_v17, %v2985_v45  ;;  %v3003_v36 = vsub.f32 %v3001_v24, %v3002_v26  ;;  %v3006_v47 = vsub.f32 %v3004_v2, %v3005_v25  ;;  %v3008_v18 = vld [vmem:[#allocation70_spill] sm:$0xff] }
 0x511   :  { %v1294_v60 = vadd.f32 %v1278_v12, %v2249_v0  ;;  %v1646_v35 = vpop.eup %1645  ;;  %1310 = vst [vmem:[#allocation7 + $0xb0] sm:$0xff] %v1293_v19  ;;  %v1281_v43 = vmul.f32 %v1644_v21, %v2988_v59 }
 0x512   :  { %v1291_v63 = vadd.f32 %v1275_v31, %v2235_v16  ;;  %v1648_v57 = vpop.eup %1647  ;;  %v1292_v61 = vadd.f32 %v1276_v28, %v2239_v23  ;;  %v1282_v0 = vmul.f32 %v1646_v35, %v2991_v34 }
 0x513   :  { %1311 = vst [vmem:[#allocation7 + $0xb8] sm:$0xff] %v1294_v60  ;;  %v1650_v6 = vpop.eup %1649  ;;  %v1297_v10 = vadd.f32 %v1281_v43, %v2265_v51  ;;  %v1279_v16 = vmul.f32 %v1648_v57, %v2994_v11 }
 0x514   :  { %1308 = vst [vmem:[#allocation7 + $0xa0] sm:$0xff] %v1291_v63  ;;  %v1652_v20 = vpop.eup %1651  ;;  %1309 = vst [vmem:[#allocation7 + $0xa8] sm:$0xff] %v1292_v61  ;;  %v1298_v48 = vadd.f32 %v1282_v0, %v2269_v42  ;;  %v1280_v23 = vmul.f32 %v1650_v6, %v2997_v4 }
 0x515   :  { %v1654_v14 = vpop.eup %1653  ;;  %1314 = vst [vmem:[#allocation7 + $0xd0] sm:$0xff] %v1297_v10  ;;  %v1295_v8 = vadd.f32 %v1279_v16, %v2255_v27  ;;  %v1285_v51 = vmul.f32 %v1652_v20, %v3000_v55 }
 0x516   :  { %v1656_v39 = vpop.eup %1655  ;;  %1315 = vst [vmem:[#allocation7 + $0xd8] sm:$0xff] %v1298_v48  ;;  %v1296_v9 = vadd.f32 %v1280_v23, %v2259_v1  ;;  %v1286_v42 = vmul.f32 %v1654_v14, %v3003_v36  ;;  %v3009_v1 = vsub.f32 %v3007_v37, %v3008_v18 }
 0x517   :  { %v1658_v15 = vpop.eup %1657  ;;  %1312 = vst [vmem:[#allocation7 + $0xc0] sm:$0xff] %v1295_v8  ;;  %v1301_v53 = vadd.f32 %v1285_v51, %v2285_v54  ;;  %v1283_v27 = vmul.f32 %v1656_v39, %v3006_v47 }
 0x518   :  { %1313 = vst [vmem:[#allocation7 + $0xc8] sm:$0xff] %v1296_v9  ;;  %v1302_v62 = vadd.f32 %v1286_v42, %v2289_v56  ;;  %v1284_v3 = vmul.f32 %v1658_v15, %v3009_v1 }
 0x519   :  { %1318 = vst [vmem:[#allocation7 + $0xf0] sm:$0xff] %v1301_v53  ;;  %v1299_v12 = vadd.f32 %v1283_v27, %v2275_v38 }
 0x51a   :  { %1319 = vst [vmem:[#allocation7 + $0xf8] sm:$0xff] %v1302_v62  ;;  %v1300_v17 = vadd.f32 %v1284_v3, %v2279_v52 }
 0x51b   :  { %1316 = vst [vmem:[#allocation7 + $0xe0] sm:$0xff] %v1299_v12 }
 0x51c   :  { %1317 = vst [vmem:[#allocation7 + $0xe8] sm:$0xff] %v1300_v17 }
 0x51d   :  { %1714 = shalt.err (!%p1711_p6)
}
 0x51e   :  { %s1715_s23 = scalar_lea.hbm %s2731_s9, 4096 }
 0x51f   :  { %p1716_p7 = scmp.ne.s32.totalorder %s2731_s9, %s1715_s23  ;;  %p1719_p8 = scmp.lt.u32.totalorder %s1715_s23, %s2731_s9 }
 0x521   :  { %p1721_p9 = pnand %p1719_p8, %p1716_p7 }
 0x523   :  { %1724 = shalt.err (!%p1721_p9)
}
 0x524   :  { %1331 = dma.vmem_to_hbm [thread:$0]  %s1326_s2, 4096, %s2731_s9, [#allocation4], %s1732_s19, %s1732_s19, %s1733_s20  }
 0x525   :  { %1729 = dma.done.wait [#allocation4], 4096  }
 0x526   :  { %1730 = vsyncadd [#allocation4], 4294963200 }
 0x527   :  { %1335 = vsyncpa [#allocation3], 1 }
 0x528   :  { %1336 = vsyncpa [#allocation6], 1 }
 0x529   :  { %1337 = vsyncpa [#allocation4], 1 }

</bundles_post_ra>
